<compile_context>
chip_gen: v7x
topology: tpu7x:2x2x1
jax: 0.10.0
libtpu: 0.0.40
codegen_flags: <defaults>
</compile_context>

<pallas_src>
import functools
import math

import jax
import jax.numpy as jnp
from jax.experimental import pallas as pl
from jax.experimental.pallas import tpu as pltpu


# ------------------------- fused decoder-stack kernel ----------------------- #

def decoder_stack_kernel(
    # inputs
    x0_ref, e_ref,
    ln1g_ref, ln1b_ref, ln2g_ref, ln2b_ref, ln3g_ref, ln3b_ref,
    wqkv_ref, bqkv_ref, wos_ref, bos_ref,
    wqc_ref, bqc_ref, wkvc_ref, bkvc_ref, woc_ref, boc_ref,
    w1_ref, b1_ref, w2_ref, b2_ref,
    fng_ref, fnb_ref,
    # output
    o_ref,
    # scratch (persists across the layer axis)
    x_sc,
    *, Bt, T, S, H, D, F, eps, nlayers, ff_chunk,
):
    dh = D // H
    R = Bt * T                      # rows handled by this batch tile
    layer = pl.program_id(1)        # layer axis is the inner ("arbitrary") axis

    # First layer of this tile: load (embed*sqrt(D) + PE) into the resident state.
    @pl.when(layer == 0)
    def _():
        x_sc[...] = x0_ref[...].astype(jnp.float32)

    # ---------------- helpers (f32 elementwise, bf16 MXU operands) ----------------
    def layer_norm(z, g, b):
        mu = jnp.mean(z, axis=-1, keepdims=True)
        var = jnp.mean(jnp.square(z - mu), axis=-1, keepdims=True)
        return (z - mu) * jax.lax.rsqrt(var + eps) * g + b

    def dense(z, w_ref, b_ref):
        # bf16 x bf16 matmul on the MXU, f32 accumulation, f32 bias add on VPU.
        return jnp.dot(z.astype(jnp.bfloat16), w_ref[0],
                       preferred_element_type=jnp.float32) + b_ref[0]

    def to_batched(z2):
        # [Bt*T, C] -> [Bt, T, C] via row slices + stack (no generic reshape).
        return jnp.stack([z2[bb * T:(bb + 1) * T, :] for bb in range(Bt)], axis=0)

    def to_flat(z3):
        # [Bt, T, C] -> [Bt*T, C]
        return jnp.concatenate([z3[bb] for bb in range(Bt)], axis=0)

    def attend(q3, k3, v3):
        # q3: [Bt, Tq, D] bf16 ; k3/v3: [Bt, Tk, D] bf16 -> [Bt, Tq, D] f32.
        # Batched over the tile's batches; loop only over heads; all head
        # outputs are assembled in vregs (no narrow stores to VMEM scratch).
        scale = 1.0 / math.sqrt(dh)
        outs = []
        for h in range(H):
            lo, hi = h * dh, (h + 1) * dh
            s = jnp.einsum('bqd,bkd->bqk', q3[:, :, lo:hi], k3[:, :, lo:hi],
                           preferred_element_type=jnp.float32) * scale
            s = s - jnp.max(s, axis=-1, keepdims=True)
            p = jnp.exp(s)
            p = p / jnp.sum(p, axis=-1, keepdims=True)
            outs.append(jnp.einsum('bqk,bkd->bqd', p.astype(jnp.bfloat16),
                                   v3[:, :, lo:hi],
                                   preferred_element_type=jnp.float32))
        return jnp.concatenate(outs, axis=-1)

    x = x_sc[...]                                                   # [R, D] f32

    # ---- self-attention sublayer (pre-norm, residual fused; unmasked) ----
    x2 = layer_norm(x, ln1g_ref[0], ln1b_ref[0])
    qkv = dense(x2, wqkv_ref, bqkv_ref)                             # [R, 3D]
    q3 = to_batched(qkv[:, 0:D]).astype(jnp.bfloat16)
    k3 = to_batched(qkv[:, D:2 * D]).astype(jnp.bfloat16)
    v3 = to_batched(qkv[:, 2 * D:3 * D]).astype(jnp.bfloat16)
    a = to_flat(attend(q3, k3, v3))                                 # [R, D] f32
    x = x + dense(a, wos_ref, bos_ref)

    # ---- cross-attention sublayer ----
    x2 = layer_norm(x, ln2g_ref[0], ln2b_ref[0])
    q3 = to_batched(dense(x2, wqc_ref, bqc_ref)).astype(jnp.bfloat16)
    # fused K|V projection of this tile's encoder rows (bf16 MXU, f32 accum)
    kv3 = jnp.stack(
        [jnp.dot(e_ref[bb], wkvc_ref[0], preferred_element_type=jnp.float32)
         + bkvc_ref[0] for bb in range(Bt)], axis=0)                # [Bt, S, 2D]
    k3 = kv3[:, :, 0:D].astype(jnp.bfloat16)
    v3 = kv3[:, :, D:2 * D].astype(jnp.bfloat16)
    a = to_flat(attend(q3, k3, v3))
    x = x + dense(a, woc_ref, boc_ref)

    # ---- feed-forward sublayer (tiled over F: no [R, F] f32 intermediate) ----
    x2 = layer_norm(x, ln3g_ref[0], ln3b_ref[0])
    x2b = x2.astype(jnp.bfloat16)
    ff = jnp.zeros((R, D), jnp.float32)
    for f0 in range(0, F, ff_chunk):
        f1 = min(F, f0 + ff_chunk)
        h = jnp.dot(x2b, w1_ref[0, :, f0:f1],
                    preferred_element_type=jnp.float32) + b1_ref[0, :, f0:f1]
        h = jnp.maximum(h, 0.0)
        ff = ff + jnp.dot(h.astype(jnp.bfloat16), w2_ref[0, f0:f1, :],
                          preferred_element_type=jnp.float32)
    x = x + ff + b2_ref[0]

    x_sc[...] = x

    # Final LayerNorm + one full-width HBM store at the last layer only.
    @pl.when(layer == nlayers - 1)
    def _():
        o_ref[...] = layer_norm(x, fng_ref[...], fnb_ref[...]).astype(o_ref.dtype)


# ------------------------------ wrapper / glue ------------------------------ #

def decoder_forward(params, trg, e_outputs, heads, num_batch_tiles=1):
    # trg: [B, T] int token ids; e_outputs: [B, S, D]
    B, T = trg.shape
    S = e_outputs.shape[1]
    D = params["embed"].shape[1]
    F = params["ff_w1"].shape[2]
    N = params["wqkv"].shape[0]
    assert B % num_batch_tiles == 0
    Bt = B // num_batch_tiles
    R = Bt * T
    BT = B * T

    # Embedding gather + sqrt(D) scale + PE add stay in JAX (fuse into one XLA op).
    x0 = (jnp.take(params["embed"], trg, axis=0) * math.sqrt(D)
          + params["pe"][:T][None, :, :]).reshape(BT, D).astype(jnp.float32)
    e = e_outputs.astype(jnp.bfloat16)          # matmul operand only -> bf16 DMA
    # TODO(synk): dropout is stochastic; implemented as eval-mode identity.

    args = (
        x0, e,
        params["ln1_g"], params["ln1_b"], params["ln2_g"], params["ln2_b"],
        params["ln3_g"], params["ln3_b"],
        params["wqkv"], params["bqkv"], params["wo_s"], params["bo_s"],
        params["wq_c"], params["bq_c"], params["wkv_c"], params["bkv_c"],
        params["wo_c"], params["bo_c"],
        params["ff_w1"], params["ff_b1"], params["ff_w2"], params["ff_b2"],
        params["norm_g"], params["norm_b"],
    )

    def layer_spec(arr):
        nd = arr.ndim
        blk = (1,) + tuple(arr.shape[1:])
        return pl.BlockSpec(blk, lambda t, l, _nd=nd: (l,) + (0,) * (_nd - 1))

    x0_spec = pl.BlockSpec((R, D), lambda t, l: (t, 0))
    e_spec = pl.BlockSpec((Bt, S, D), lambda t, l: (t, 0, 0))
    norm_spec = pl.BlockSpec((1, D), lambda t, l: (0, 0))
    in_specs = ([x0_spec, e_spec]
                + [layer_spec(a) for a in args[2:22]]
                + [norm_spec, norm_spec])
    out_spec = pl.BlockSpec((R, D), lambda t, l: (t, 0))

    # Explicit VMEM budget: double-buffered per-layer weights + resident blocks.
    layer_keys = ["ln1_g", "ln1_b", "ln2_g", "ln2_b", "ln3_g", "ln3_b",
                  "wqkv", "bqkv", "wo_s", "bo_s", "wq_c", "bq_c", "wkv_c",
                  "bkv_c", "wo_c", "bo_c", "ff_w1", "ff_b1", "ff_w2", "ff_b2"]
    layer_bytes = sum(int(math.prod(params[k].shape[1:])) * params[k].dtype.itemsize
                      for k in layer_keys)
    resident_bytes = 3 * R * D * 4 + Bt * S * D * 2
    vmem_budget = int(min(100 << 20,
                          max(32 << 20, 3 * layer_bytes + 4 * resident_bytes + (4 << 20))))

    flops_layer = (2 * BT * D * 3 * D + 3 * (2 * BT * D * D) + 2 * B * S * D * 2 * D
                   + 4 * BT * D * F + 4 * BT * (T + S) * D)
    bytes_accessed = sum(int(math.prod(a.shape)) * a.dtype.itemsize for a in args) + BT * D * 4
    cost = pl.CostEstimate(flops=N * flops_layer,
                           transcendentals=N * B * heads * T * (T + S),
                           bytes_accessed=int(bytes_accessed))

    ff_chunk = min(F, 512)

    out = pl.pallas_call(
        functools.partial(decoder_stack_kernel, Bt=Bt, T=T, S=S, H=heads, D=D,
                          F=F, eps=1e-6, nlayers=N, ff_chunk=ff_chunk),
        out_shape=jax.ShapeDtypeStruct((BT, D), jnp.float32),
        grid=(num_batch_tiles, N),
        in_specs=in_specs,
        out_specs=out_spec,
        scratch_shapes=[pltpu.VMEM((R, D), jnp.float32)],  # resident activation
        compiler_params=pltpu.CompilerParams(
            # batch tiles are independent (parallel); layer axis carries state.
            dimension_semantics=("parallel", "arbitrary"),
            vmem_limit_bytes=vmem_budget),
        cost_estimate=cost,
    )(*args)
    return out.reshape(B, T, D)


# ------------------------------ parameters ---------------------------------- #

def sinusoidal_pe(max_len, d_model):
    pos = jnp.arange(max_len, dtype=jnp.float32)[:, None]
    i = jnp.arange(0, d_model, 2, dtype=jnp.float32)
    div = jnp.exp(-jnp.log(10000.0) * i / d_model)
    pe = jnp.zeros((max_len, d_model), jnp.float32)
    pe = pe.at[:, 0::2].set(jnp.sin(pos * div))
    pe = pe.at[:, 1::2].set(jnp.cos(pos * div))
    return pe


def init_params(key, vocab_size, d_model, d_ff, N, max_len=64):
    D, F = d_model, d_ff

    def w(k, *shape):  # matmul weights stored bf16 (MXU operands, half the DMA)
        return (0.02 * jax.random.normal(k, shape, jnp.float32)).astype(jnp.bfloat16)

    keys = jax.random.split(key, 8)
    ones = lambda *s: jnp.ones(s, jnp.float32)
    zeros = lambda *s: jnp.zeros(s, jnp.float32)
    return dict(
        embed=0.02 * jax.random.normal(keys[0], (vocab_size, D), jnp.float32),
        pe=sinusoidal_pe(max_len, D),
        ln1_g=ones(N, 1, D), ln1_b=zeros(N, 1, D),
        ln2_g=ones(N, 1, D), ln2_b=zeros(N, 1, D),
        ln3_g=ones(N, 1, D), ln3_b=zeros(N, 1, D),
        wqkv=w(keys[1], N, D, 3 * D), bqkv=zeros(N, 1, 3 * D),   # fused Q|K|V
        wo_s=w(keys[2], N, D, D),     bo_s=zeros(N, 1, D),
        wq_c=w(keys[3], N, D, D),     bq_c=zeros(N, 1, D),
        wkv_c=w(keys[4], N, D, 2 * D), bkv_c=zeros(N, 1, 2 * D),  # fused K|V
        wo_c=w(keys[5], N, D, D),     bo_c=zeros(N, 1, D),
        ff_w1=w(keys[6], N, D, F),    ff_b1=zeros(N, 1, F),
        ff_w2=w(keys[7], N, F, D),    ff_b2=zeros(N, 1, D),
        norm_g=ones(1, D),            norm_b=zeros(1, D),
    )


# --------------------------------- main -------------------------------------- #

if __name__ == "__main__":
    vocab_size, d_model, d_ff, N, heads, dropout = 50, 32, 64, 2, 4, 0.1
    B, T, S = 2, 8, 10

    key = jax.random.PRNGKey(0)
    kp, kt, ke = jax.random.split(key, 3)
    params = init_params(kp, vocab_size, d_model, d_ff, N, max_len=64)
    trg = jax.random.randint(kt, (B, T), 0, vocab_size)
    e_outputs = jax.random.normal(ke, (B, S, d_model), dtype=jnp.float32)

    fwd = jax.jit(functools.partial(decoder_forward, heads=heads,
                                    num_batch_tiles=2))
    out = fwd(params, trg, e_outputs)
    out = jax.block_until_ready(out)

    assert out.shape == (B, T, d_model), out.shape
    assert bool(jnp.all(jnp.isfinite(out)))
    print("KERNEL_OK")
</pallas_src>

<mosaic_0001>
module attributes {stable_mosaic.version = 11 : i64} {
  func.func @decoder_stack_kernel(%arg0: i32, %arg1: i32, %arg2: memref<8x32xf32, #tpu.memory_space<vmem>>, %arg3: memref<1x10x32xbf16, #tpu.memory_space<vmem>>, %arg4: memref<1x1x32xf32, #tpu.memory_space<vmem>>, %arg5: memref<1x1x32xf32, #tpu.memory_space<vmem>>, %arg6: memref<1x1x32xf32, #tpu.memory_space<vmem>>, %arg7: memref<1x1x32xf32, #tpu.memory_space<vmem>>, %arg8: memref<1x1x32xf32, #tpu.memory_space<vmem>>, %arg9: memref<1x1x32xf32, #tpu.memory_space<vmem>>, %arg10: memref<1x32x96xbf16, #tpu.memory_space<vmem>>, %arg11: memref<1x1x96xf32, #tpu.memory_space<vmem>>, %arg12: memref<1x32x32xbf16, #tpu.memory_space<vmem>>, %arg13: memref<1x1x32xf32, #tpu.memory_space<vmem>>, %arg14: memref<1x32x32xbf16, #tpu.memory_space<vmem>>, %arg15: memref<1x1x32xf32, #tpu.memory_space<vmem>>, %arg16: memref<1x32x64xbf16, #tpu.memory_space<vmem>>, %arg17: memref<1x1x64xf32, #tpu.memory_space<vmem>>, %arg18: memref<1x32x32xbf16, #tpu.memory_space<vmem>>, %arg19: memref<1x1x32xf32, #tpu.memory_space<vmem>>, %arg20: memref<1x32x64xbf16, #tpu.memory_space<vmem>>, %arg21: memref<1x1x64xf32, #tpu.memory_space<vmem>>, %arg22: memref<1x64x32xbf16, #tpu.memory_space<vmem>>, %arg23: memref<1x1x32xf32, #tpu.memory_space<vmem>>, %arg24: memref<1x32xf32, #tpu.memory_space<vmem>>, %arg25: memref<1x32xf32, #tpu.memory_space<vmem>>, %arg26: memref<8x32xf32, #tpu.memory_space<vmem>>, %arg27: memref<8x32xf32, #tpu.memory_space<vmem>>) attributes {dimension_semantics = [#tpu.dimension_semantics<parallel>, #tpu.dimension_semantics<arbitrary>], iteration_bounds = array<i64: 2, 2>, scalar_prefetch = 0 : i64, scratch_operands = 1 : i64, tpu.core_type = #tpu.core_type<tc>, window_params = [{transform_indices = @transform_0, window_bounds = array<i64: 8, 32>}, {transform_indices = @transform_1, window_bounds = array<i64: 1, 10, 32>}, {transform_indices = @transform_2, window_bounds = array<i64: 1, 1, 32>}, {transform_indices = @transform_3, window_bounds = array<i64: 1, 1, 32>}, {transform_indices = @transform_4, window_bounds = array<i64: 1, 1, 32>}, {transform_indices = @transform_5, window_bounds = array<i64: 1, 1, 32>}, {transform_indices = @transform_6, window_bounds = array<i64: 1, 1, 32>}, {transform_indices = @transform_7, window_bounds = array<i64: 1, 1, 32>}, {transform_indices = @transform_8, window_bounds = array<i64: 1, 32, 96>}, {transform_indices = @transform_9, window_bounds = array<i64: 1, 1, 96>}, {transform_indices = @transform_10, window_bounds = array<i64: 1, 32, 32>}, {transform_indices = @transform_11, window_bounds = array<i64: 1, 1, 32>}, {transform_indices = @transform_12, window_bounds = array<i64: 1, 32, 32>}, {transform_indices = @transform_13, window_bounds = array<i64: 1, 1, 32>}, {transform_indices = @transform_14, window_bounds = array<i64: 1, 32, 64>}, {transform_indices = @transform_15, window_bounds = array<i64: 1, 1, 64>}, {transform_indices = @transform_16, window_bounds = array<i64: 1, 32, 32>}, {transform_indices = @transform_17, window_bounds = array<i64: 1, 1, 32>}, {transform_indices = @transform_18, window_bounds = array<i64: 1, 32, 64>}, {transform_indices = @transform_19, window_bounds = array<i64: 1, 1, 64>}, {transform_indices = @transform_20, window_bounds = array<i64: 1, 64, 32>}, {transform_indices = @transform_21, window_bounds = array<i64: 1, 1, 32>}, {pipeline_mode = #tpu.pipeline_mode<synchronous>, transform_indices = @transform_22, window_bounds = array<i64: 1, 32>}, {pipeline_mode = #tpu.pipeline_mode<synchronous>, transform_indices = @transform_23, window_bounds = array<i64: 1, 32>}, {transform_indices = @transform_24, window_bounds = array<i64: 8, 32>}]} {
    %c0_i32 = arith.constant 0 : i32
    %0 = arith.cmpi eq, %arg1, %c0_i32 : i32
    %1 = arith.extui %0 : i1 to i32
    %c0_i32_0 = arith.constant 0 : i32
    %2 = arith.cmpi ne, %1, %c0_i32_0 : i32
    scf.if %2 {
      %c0_131 = arith.constant 0 : index
      %c0_132 = arith.constant 0 : index
      %306 = vector.load %arg2[%c0_131, %c0_132] : memref<8x32xf32, #tpu.memory_space<vmem>>, vector<8x32xf32>
      %c0_133 = arith.constant 0 : index
      %c0_134 = arith.constant 0 : index
      %307 = vector.load %arg27[%c0_133, %c0_134] : memref<8x32xf32, #tpu.memory_space<vmem>>, vector<8x32xf32>
      tpu.vector_store %arg27[%c0_133, %c0_134], %306 {strides = array<i32>} : memref<8x32xf32, #tpu.memory_space<vmem>>, vector<8x32xf32>,
    } else {
    }
    %c0 = arith.constant 0 : index
    %c0_1 = arith.constant 0 : index
    %3 = vector.load %arg27[%c0, %c0_1] : memref<8x32xf32, #tpu.memory_space<vmem>>, vector<8x32xf32>
    %c0_2 = arith.constant 0 : index
    %c0_3 = arith.constant 0 : index
    %c0_4 = arith.constant 0 : index
    %4 = vector.load %arg4[%c0_2, %c0_3, %c0_4] : memref<1x1x32xf32, #tpu.memory_space<vmem>>, vector<1x1x32xf32>
    %5 = vector.shape_cast %4 : vector<1x1x32xf32> to vector<1x32xf32>
    %c0_5 = arith.constant 0 : index
    %c0_6 = arith.constant 0 : index
    %c0_7 = arith.constant 0 : index
    %6 = vector.load %arg5[%c0_5, %c0_6, %c0_7] : memref<1x1x32xf32, #tpu.memory_space<vmem>>, vector<1x1x32xf32>
    %7 = vector.shape_cast %6 : vector<1x1x32xf32> to vector<1x32xf32>
    %cst = arith.constant dense<0.000000e+00> : vector<8xf32>
    %8 = vector.multi_reduction <add>, %3, %cst [1] : vector<8x32xf32> to vector<8xf32>
    %9 = vector.shape_cast %8 : vector<8xf32> to vector<8x1xf32>
    %cst_8 = arith.constant 3.200000e+01 : f32
    %10 = vector.broadcast %cst_8 : f32 to vector<8x1xf32>
    %11 = arith.divf %9, %10 : vector<8x1xf32>
    %12 = vector.broadcast %11 : vector<8x1xf32> to vector<8x32xf32>
    %13 = arith.subf %3, %12 : vector<8x32xf32>
    %14 = arith.mulf %13, %13 : vector<8x32xf32>
    %cst_9 = arith.constant dense<0.000000e+00> : vector<8xf32>
    %15 = vector.multi_reduction <add>, %14, %cst_9 [1] : vector<8x32xf32> to vector<8xf32>
    %16 = vector.shape_cast %15 : vector<8xf32> to vector<8x1xf32>
    %cst_10 = arith.constant 3.200000e+01 : f32
    %17 = vector.broadcast %cst_10 : f32 to vector<8x1xf32>
    %18 = arith.divf %16, %17 : vector<8x1xf32>
    %19 = vector.broadcast %11 : vector<8x1xf32> to vector<8x32xf32>
    %20 = arith.subf %3, %19 : vector<8x32xf32>
    %cst_11 = arith.constant 9.99999997E-7 : f32
    %21 = vector.broadcast %cst_11 : f32 to vector<8x1xf32>
    %22 = arith.addf %18, %21 : vector<8x1xf32>
    %23 = math.rsqrt %22 : vector<8x1xf32>
    %24 = vector.broadcast %23 : vector<8x1xf32> to vector<8x32xf32>
    %25 = arith.mulf %20, %24 : vector<8x32xf32>
    %26 = vector.broadcast %5 : vector<1x32xf32> to vector<8x32xf32>
    %27 = arith.mulf %25, %26 : vector<8x32xf32>
    %28 = vector.broadcast %7 : vector<1x32xf32> to vector<8x32xf32>
    %29 = arith.addf %27, %28 : vector<8x32xf32>
    %30 = arith.truncf %29 : vector<8x32xf32> to vector<8x32xbf16>
    %c0_12 = arith.constant 0 : index
    %c0_13 = arith.constant 0 : index
    %c0_14 = arith.constant 0 : index
    %31 = vector.load %arg10[%c0_12, %c0_13, %c0_14] : memref<1x32x96xbf16, #tpu.memory_space<vmem>>, vector<1x32x96xbf16>
    %32 = vector.shape_cast %31 : vector<1x32x96xbf16> to vector<32x96xbf16>
    %cst_15 = arith.constant dense<0.000000e+00> : vector<8x96xf32>
    %33 = tpu.matmul %30, %32, %cst_15 {dimension_numbers = #tpu.dot_dimension_numbers<[1], [0], [0], [1], [0, 0, 1, 1], [], []>} : vector<8x32xbf16>, vector<32x96xbf16>, vector<8x96xf32> -> vector<8x96xf32>
    %c0_16 = arith.constant 0 : index
    %c0_17 = arith.constant 0 : index
    %c0_18 = arith.constant 0 : index
    %34 = vector.load %arg11[%c0_16, %c0_17, %c0_18] : memref<1x1x96xf32, #tpu.memory_space<vmem>>, vector<1x1x96xf32>
    %35 = vector.shape_cast %34 : vector<1x1x96xf32> to vector<1x96xf32>
    %36 = vector.broadcast %35 : vector<1x96xf32> to vector<8x96xf32>
    %37 = arith.addf %33, %36 : vector<8x96xf32>
    %38 = vector.extract_strided_slice %37 {offsets = [0, 0], sizes = [8, 32], strides = [1, 1]} : vector<8x96xf32> to vector<8x32xf32>
    %39 = vector.shape_cast %38 : vector<8x32xf32> to vector<1x8x32xf32>
    %40 = arith.truncf %39 : vector<1x8x32xf32> to vector<1x8x32xbf16>
    %41 = vector.extract_strided_slice %37 {offsets = [0, 32], sizes = [8, 32], strides = [1, 1]} : vector<8x96xf32> to vector<8x32xf32>
    %42 = vector.shape_cast %41 : vector<8x32xf32> to vector<1x8x32xf32>
    %43 = arith.truncf %42 : vector<1x8x32xf32> to vector<1x8x32xbf16>
    %44 = vector.extract_strided_slice %37 {offsets = [0, 64], sizes = [8, 32], strides = [1, 1]} : vector<8x96xf32> to vector<8x32xf32>
    %45 = vector.shape_cast %44 : vector<8x32xf32> to vector<1x8x32xf32>
    %46 = arith.truncf %45 : vector<1x8x32xf32> to vector<1x8x32xbf16>
    %47 = vector.extract_strided_slice %40 {offsets = [0, 0, 0], sizes = [1, 8, 8], strides = [1, 1, 1]} : vector<1x8x32xbf16> to vector<1x8x8xbf16>
    %48 = vector.extract_strided_slice %43 {offsets = [0, 0, 0], sizes = [1, 8, 8], strides = [1, 1, 1]} : vector<1x8x32xbf16> to vector<1x8x8xbf16>
    "tpu.trace_start"() <{level = 10 : i32, message = "bqd,bkd->bqk"}> : () -> ()
    %cst_19 = arith.constant dense<0.000000e+00> : vector<1x8x8xf32>
    %49 = tpu.matmul %47, %48, %cst_19 {dimension_numbers = #tpu.dot_dimension_numbers<[2], [2], [1], [1], [0, 0, 0, 1, 1, 1], [0], [0]>} : vector<1x8x8xbf16>, vector<1x8x8xbf16>, vector<1x8x8xf32> -> vector<1x8x8xf32>
    "tpu.trace_stop"() : () -> ()
    %cst_20 = arith.constant 0.353553385 : f32
    %50 = vector.broadcast %cst_20 : f32 to vector<1x8x8xf32>
    %51 = arith.mulf %49, %50 : vector<1x8x8xf32>
    %cst_21 = arith.constant dense<0xFF800000> : vector<1x8xf32>
    %52 = vector.multi_reduction <maximumf>, %51, %cst_21 [2] : vector<1x8x8xf32> to vector<1x8xf32>
    %53 = vector.shape_cast %52 : vector<1x8xf32> to vector<1x8x1xf32>
    %54 = vector.broadcast %53 : vector<1x8x1xf32> to vector<1x8x8xf32>
    %55 = arith.subf %51, %54 : vector<1x8x8xf32>
    %56 = math.exp %55 : vector<1x8x8xf32>
    %cst_22 = arith.constant dense<0.000000e+00> : vector<1x8xf32>
    %57 = vector.multi_reduction <add>, %56, %cst_22 [2] : vector<1x8x8xf32> to vector<1x8xf32>
    %58 = vector.shape_cast %57 : vector<1x8xf32> to vector<1x8x1xf32>
    %59 = vector.broadcast %58 : vector<1x8x1xf32> to vector<1x8x8xf32>
    %60 = arith.divf %56, %59 : vector<1x8x8xf32>
    %61 = arith.truncf %60 : vector<1x8x8xf32> to vector<1x8x8xbf16>
    %62 = vector.extract_strided_slice %46 {offsets = [0, 0, 0], sizes = [1, 8, 8], strides = [1, 1, 1]} : vector<1x8x32xbf16> to vector<1x8x8xbf16>
    "tpu.trace_start"() <{level = 10 : i32, message = "bqk,bkd->bqd"}> : () -> ()
    %cst_23 = arith.constant dense<0.000000e+00> : vector<1x8x8xf32>
    %63 = tpu.matmul %61, %62, %cst_23 {dimension_numbers = #tpu.dot_dimension_numbers<[2], [1], [1], [2], [0, 0, 0, 1, 1, 2], [0], [0]>} : vector<1x8x8xbf16>, vector<1x8x8xbf16>, vector<1x8x8xf32> -> vector<1x8x8xf32>
    "tpu.trace_stop"() : () -> ()
    %64 = vector.extract_strided_slice %40 {offsets = [0, 0, 8], sizes = [1, 8, 8], strides = [1, 1, 1]} : vector<1x8x32xbf16> to vector<1x8x8xbf16>
    %65 = vector.extract_strided_slice %43 {offsets = [0, 0, 8], sizes = [1, 8, 8], strides = [1, 1, 1]} : vector<1x8x32xbf16> to vector<1x8x8xbf16>
    "tpu.trace_start"() <{level = 10 : i32, message = "bqd,bkd->bqk"}> : () -> ()
    %cst_24 = arith.constant dense<0.000000e+00> : vector<1x8x8xf32>
    %66 = tpu.matmul %64, %65, %cst_24 {dimension_numbers = #tpu.dot_dimension_numbers<[2], [2], [1], [1], [0, 0, 0, 1, 1, 1], [0], [0]>} : vector<1x8x8xbf16>, vector<1x8x8xbf16>, vector<1x8x8xf32> -> vector<1x8x8xf32>
    "tpu.trace_stop"() : () -> ()
    %cst_25 = arith.constant 0.353553385 : f32
    %67 = vector.broadcast %cst_25 : f32 to vector<1x8x8xf32>
    %68 = arith.mulf %66, %67 : vector<1x8x8xf32>
    %cst_26 = arith.constant dense<0xFF800000> : vector<1x8xf32>
    %69 = vector.multi_reduction <maximumf>, %68, %cst_26 [2] : vector<1x8x8xf32> to vector<1x8xf32>
    %70 = vector.shape_cast %69 : vector<1x8xf32> to vector<1x8x1xf32>
    %71 = vector.broadcast %70 : vector<1x8x1xf32> to vector<1x8x8xf32>
    %72 = arith.subf %68, %71 : vector<1x8x8xf32>
    %73 = math.exp %72 : vector<1x8x8xf32>
    %cst_27 = arith.constant dense<0.000000e+00> : vector<1x8xf32>
    %74 = vector.multi_reduction <add>, %73, %cst_27 [2] : vector<1x8x8xf32> to vector<1x8xf32>
    %75 = vector.shape_cast %74 : vector<1x8xf32> to vector<1x8x1xf32>
    %76 = vector.broadcast %75 : vector<1x8x1xf32> to vector<1x8x8xf32>
    %77 = arith.divf %73, %76 : vector<1x8x8xf32>
    %78 = arith.truncf %77 : vector<1x8x8xf32> to vector<1x8x8xbf16>
    %79 = vector.extract_strided_slice %46 {offsets = [0, 0, 8], sizes = [1, 8, 8], strides = [1, 1, 1]} : vector<1x8x32xbf16> to vector<1x8x8xbf16>
    "tpu.trace_start"() <{level = 10 : i32, message = "bqk,bkd->bqd"}> : () -> ()
    %cst_28 = arith.constant dense<0.000000e+00> : vector<1x8x8xf32>
    %80 = tpu.matmul %78, %79, %cst_28 {dimension_numbers = #tpu.dot_dimension_numbers<[2], [1], [1], [2], [0, 0, 0, 1, 1, 2], [0], [0]>} : vector<1x8x8xbf16>, vector<1x8x8xbf16>, vector<1x8x8xf32> -> vector<1x8x8xf32>
    "tpu.trace_stop"() : () -> ()
    %81 = vector.extract_strided_slice %40 {offsets = [0, 0, 16], sizes = [1, 8, 8], strides = [1, 1, 1]} : vector<1x8x32xbf16> to vector<1x8x8xbf16>
    %82 = vector.extract_strided_slice %43 {offsets = [0, 0, 16], sizes = [1, 8, 8], strides = [1, 1, 1]} : vector<1x8x32xbf16> to vector<1x8x8xbf16>
    "tpu.trace_start"() <{level = 10 : i32, message = "bqd,bkd->bqk"}> : () -> ()
    %cst_29 = arith.constant dense<0.000000e+00> : vector<1x8x8xf32>
    %83 = tpu.matmul %81, %82, %cst_29 {dimension_numbers = #tpu.dot_dimension_numbers<[2], [2], [1], [1], [0, 0, 0, 1, 1, 1], [0], [0]>} : vector<1x8x8xbf16>, vector<1x8x8xbf16>, vector<1x8x8xf32> -> vector<1x8x8xf32>
    "tpu.trace_stop"() : () -> ()
    %cst_30 = arith.constant 0.353553385 : f32
    %84 = vector.broadcast %cst_30 : f32 to vector<1x8x8xf32>
    %85 = arith.mulf %83, %84 : vector<1x8x8xf32>
    %cst_31 = arith.constant dense<0xFF800000> : vector<1x8xf32>
    %86 = vector.multi_reduction <maximumf>, %85, %cst_31 [2] : vector<1x8x8xf32> to vector<1x8xf32>
    %87 = vector.shape_cast %86 : vector<1x8xf32> to vector<1x8x1xf32>
    %88 = vector.broadcast %87 : vector<1x8x1xf32> to vector<1x8x8xf32>
    %89 = arith.subf %85, %88 : vector<1x8x8xf32>
    %90 = math.exp %89 : vector<1x8x8xf32>
    %cst_32 = arith.constant dense<0.000000e+00> : vector<1x8xf32>
    %91 = vector.multi_reduction <add>, %90, %cst_32 [2] : vector<1x8x8xf32> to vector<1x8xf32>
    %92 = vector.shape_cast %91 : vector<1x8xf32> to vector<1x8x1xf32>
    %93 = vector.broadcast %92 : vector<1x8x1xf32> to vector<1x8x8xf32>
    %94 = arith.divf %90, %93 : vector<1x8x8xf32>
    %95 = arith.truncf %94 : vector<1x8x8xf32> to vector<1x8x8xbf16>
    %96 = vector.extract_strided_slice %46 {offsets = [0, 0, 16], sizes = [1, 8, 8], strides = [1, 1, 1]} : vector<1x8x32xbf16> to vector<1x8x8xbf16>
    "tpu.trace_start"() <{level = 10 : i32, message = "bqk,bkd->bqd"}> : () -> ()
    %cst_33 = arith.constant dense<0.000000e+00> : vector<1x8x8xf32>
    %97 = tpu.matmul %95, %96, %cst_33 {dimension_numbers = #tpu.dot_dimension_numbers<[2], [1], [1], [2], [0, 0, 0, 1, 1, 2], [0], [0]>} : vector<1x8x8xbf16>, vector<1x8x8xbf16>, vector<1x8x8xf32> -> vector<1x8x8xf32>
    "tpu.trace_stop"() : () -> ()
    %98 = vector.extract_strided_slice %40 {offsets = [0, 0, 24], sizes = [1, 8, 8], strides = [1, 1, 1]} : vector<1x8x32xbf16> to vector<1x8x8xbf16>
    %99 = vector.extract_strided_slice %43 {offsets = [0, 0, 24], sizes = [1, 8, 8], strides = [1, 1, 1]} : vector<1x8x32xbf16> to vector<1x8x8xbf16>
    "tpu.trace_start"() <{level = 10 : i32, message = "bqd,bkd->bqk"}> : () -> ()
    %cst_34 = arith.constant dense<0.000000e+00> : vector<1x8x8xf32>
    %100 = tpu.matmul %98, %99, %cst_34 {dimension_numbers = #tpu.dot_dimension_numbers<[2], [2], [1], [1], [0, 0, 0, 1, 1, 1], [0], [0]>} : vector<1x8x8xbf16>, vector<1x8x8xbf16>, vector<1x8x8xf32> -> vector<1x8x8xf32>
    "tpu.trace_stop"() : () -> ()
    %cst_35 = arith.constant 0.353553385 : f32
    %101 = vector.broadcast %cst_35 : f32 to vector<1x8x8xf32>
    %102 = arith.mulf %100, %101 : vector<1x8x8xf32>
    %cst_36 = arith.constant dense<0xFF800000> : vector<1x8xf32>
    %103 = vector.multi_reduction <maximumf>, %102, %cst_36 [2] : vector<1x8x8xf32> to vector<1x8xf32>
    %104 = vector.shape_cast %103 : vector<1x8xf32> to vector<1x8x1xf32>
    %105 = vector.broadcast %104 : vector<1x8x1xf32> to vector<1x8x8xf32>
    %106 = arith.subf %102, %105 : vector<1x8x8xf32>
    %107 = math.exp %106 : vector<1x8x8xf32>
    %cst_37 = arith.constant dense<0.000000e+00> : vector<1x8xf32>
    %108 = vector.multi_reduction <add>, %107, %cst_37 [2] : vector<1x8x8xf32> to vector<1x8xf32>
    %109 = vector.shape_cast %108 : vector<1x8xf32> to vector<1x8x1xf32>
    %110 = vector.broadcast %109 : vector<1x8x1xf32> to vector<1x8x8xf32>
    %111 = arith.divf %107, %110 : vector<1x8x8xf32>
    %112 = arith.truncf %111 : vector<1x8x8xf32> to vector<1x8x8xbf16>
    %113 = vector.extract_strided_slice %46 {offsets = [0, 0, 24], sizes = [1, 8, 8], strides = [1, 1, 1]} : vector<1x8x32xbf16> to vector<1x8x8xbf16>
    "tpu.trace_start"() <{level = 10 : i32, message = "bqk,bkd->bqd"}> : () -> ()
    %cst_38 = arith.constant dense<0.000000e+00> : vector<1x8x8xf32>
    %114 = tpu.matmul %112, %113, %cst_38 {dimension_numbers = #tpu.dot_dimension_numbers<[2], [1], [1], [2], [0, 0, 0, 1, 1, 2], [0], [0]>} : vector<1x8x8xbf16>, vector<1x8x8xbf16>, vector<1x8x8xf32> -> vector<1x8x8xf32>
    "tpu.trace_stop"() : () -> ()
    %115 = tpu.concatenate %63, %80, %97, %114 in 2 : vector<1x8x8xf32>, vector<1x8x8xf32>, vector<1x8x8xf32>, vector<1x8x8xf32> -> vector<1x8x32xf32>
    %116 = vector.shape_cast %115 : vector<1x8x32xf32> to vector<8x32xf32>
    %117 = arith.truncf %116 : vector<8x32xf32> to vector<8x32xbf16>
    %c0_39 = arith.constant 0 : index
    %c0_40 = arith.constant 0 : index
    %c0_41 = arith.constant 0 : index
    %118 = vector.load %arg12[%c0_39, %c0_40, %c0_41] : memref<1x32x32xbf16, #tpu.memory_space<vmem>>, vector<1x32x32xbf16>
    %119 = vector.shape_cast %118 : vector<1x32x32xbf16> to vector<32x32xbf16>
    %cst_42 = arith.constant dense<0.000000e+00> : vector<8x32xf32>
    %120 = tpu.matmul %117, %119, %cst_42 {dimension_numbers = #tpu.dot_dimension_numbers<[1], [0], [0], [1], [0, 0, 1, 1], [], []>} : vector<8x32xbf16>, vector<32x32xbf16>, vector<8x32xf32> -> vector<8x32xf32>
    %c0_43 = arith.constant 0 : index
    %c0_44 = arith.constant 0 : index
    %c0_45 = arith.constant 0 : index
    %121 = vector.load %arg13[%c0_43, %c0_44, %c0_45] : memref<1x1x32xf32, #tpu.memory_space<vmem>>, vector<1x1x32xf32>
    %122 = vector.shape_cast %121 : vector<1x1x32xf32> to vector<1x32xf32>
    %123 = vector.broadcast %122 : vector<1x32xf32> to vector<8x32xf32>
    %124 = arith.addf %120, %123 : vector<8x32xf32>
    %125 = arith.addf %3, %124 : vector<8x32xf32>
    %c0_46 = arith.constant 0 : index
    %c0_47 = arith.constant 0 : index
    %c0_48 = arith.constant 0 : index
    %126 = vector.load %arg6[%c0_46, %c0_47, %c0_48] : memref<1x1x32xf32, #tpu.memory_space<vmem>>, vector<1x1x32xf32>
    %127 = vector.shape_cast %126 : vector<1x1x32xf32> to vector<1x32xf32>
    %c0_49 = arith.constant 0 : index
    %c0_50 = arith.constant 0 : index
    %c0_51 = arith.constant 0 : index
    %128 = vector.load %arg7[%c0_49, %c0_50, %c0_51] : memref<1x1x32xf32, #tpu.memory_space<vmem>>, vector<1x1x32xf32>
    %129 = vector.shape_cast %128 : vector<1x1x32xf32> to vector<1x32xf32>
    %cst_52 = arith.constant dense<0.000000e+00> : vector<8xf32>
    %130 = vector.multi_reduction <add>, %125, %cst_52 [1] : vector<8x32xf32> to vector<8xf32>
    %131 = vector.shape_cast %130 : vector<8xf32> to vector<8x1xf32>
    %cst_53 = arith.constant 3.200000e+01 : f32
    %132 = vector.broadcast %cst_53 : f32 to vector<8x1xf32>
    %133 = arith.divf %131, %132 : vector<8x1xf32>
    %134 = vector.broadcast %133 : vector<8x1xf32> to vector<8x32xf32>
    %135 = arith.subf %125, %134 : vector<8x32xf32>
    %136 = arith.mulf %135, %135 : vector<8x32xf32>
    %cst_54 = arith.constant dense<0.000000e+00> : vector<8xf32>
    %137 = vector.multi_reduction <add>, %136, %cst_54 [1] : vector<8x32xf32> to vector<8xf32>
    %138 = vector.shape_cast %137 : vector<8xf32> to vector<8x1xf32>
    %cst_55 = arith.constant 3.200000e+01 : f32
    %139 = vector.broadcast %cst_55 : f32 to vector<8x1xf32>
    %140 = arith.divf %138, %139 : vector<8x1xf32>
    %141 = vector.broadcast %133 : vector<8x1xf32> to vector<8x32xf32>
    %142 = arith.subf %125, %141 : vector<8x32xf32>
    %cst_56 = arith.constant 9.99999997E-7 : f32
    %143 = vector.broadcast %cst_56 : f32 to vector<8x1xf32>
    %144 = arith.addf %140, %143 : vector<8x1xf32>
    %145 = math.rsqrt %144 : vector<8x1xf32>
    %146 = vector.broadcast %145 : vector<8x1xf32> to vector<8x32xf32>
    %147 = arith.mulf %142, %146 : vector<8x32xf32>
    %148 = vector.broadcast %127 : vector<1x32xf32> to vector<8x32xf32>
    %149 = arith.mulf %147, %148 : vector<8x32xf32>
    %150 = vector.broadcast %129 : vector<1x32xf32> to vector<8x32xf32>
    %151 = arith.addf %149, %150 : vector<8x32xf32>
    %152 = arith.truncf %151 : vector<8x32xf32> to vector<8x32xbf16>
    %c0_57 = arith.constant 0 : index
    %c0_58 = arith.constant 0 : index
    %c0_59 = arith.constant 0 : index
    %153 = vector.load %arg14[%c0_57, %c0_58, %c0_59] : memref<1x32x32xbf16, #tpu.memory_space<vmem>>, vector<1x32x32xbf16>
    %154 = vector.shape_cast %153 : vector<1x32x32xbf16> to vector<32x32xbf16>
    %cst_60 = arith.constant dense<0.000000e+00> : vector<8x32xf32>
    %155 = tpu.matmul %152, %154, %cst_60 {dimension_numbers = #tpu.dot_dimension_numbers<[1], [0], [0], [1], [0, 0, 1, 1], [], []>} : vector<8x32xbf16>, vector<32x32xbf16>, vector<8x32xf32> -> vector<8x32xf32>
    %c0_61 = arith.constant 0 : index
    %c0_62 = arith.constant 0 : index
    %c0_63 = arith.constant 0 : index
    %156 = vector.load %arg15[%c0_61, %c0_62, %c0_63] : memref<1x1x32xf32, #tpu.memory_space<vmem>>, vector<1x1x32xf32>
    %157 = vector.shape_cast %156 : vector<1x1x32xf32> to vector<1x32xf32>
    %158 = vector.broadcast %157 : vector<1x32xf32> to vector<8x32xf32>
    %159 = arith.addf %155, %158 : vector<8x32xf32>
    %160 = vector.shape_cast %159 : vector<8x32xf32> to vector<1x8x32xf32>
    %161 = arith.truncf %160 : vector<1x8x32xf32> to vector<1x8x32xbf16>
    %c0_64 = arith.constant 0 : index
    %c0_65 = arith.constant 0 : index
    %c0_66 = arith.constant 0 : index
    %162 = vector.load %arg3[%c0_64, %c0_65, %c0_66] : memref<1x10x32xbf16, #tpu.memory_space<vmem>>, vector<1x10x32xbf16>
    %163 = vector.shape_cast %162 : vector<1x10x32xbf16> to vector<10x32xbf16>
    %c0_67 = arith.constant 0 : index
    %c0_68 = arith.constant 0 : index
    %c0_69 = arith.constant 0 : index
    %164 = vector.load %arg16[%c0_67, %c0_68, %c0_69] : memref<1x32x64xbf16, #tpu.memory_space<vmem>>, vector<1x32x64xbf16>
    %165 = vector.shape_cast %164 : vector<1x32x64xbf16> to vector<32x64xbf16>
    %cst_70 = arith.constant dense<0.000000e+00> : vector<10x64xf32>
    %166 = tpu.matmul %163, %165, %cst_70 {dimension_numbers = #tpu.dot_dimension_numbers<[1], [0], [0], [1], [0, 0, 1, 1], [], []>} : vector<10x32xbf16>, vector<32x64xbf16>, vector<10x64xf32> -> vector<10x64xf32>
    %c0_71 = arith.constant 0 : index
    %c0_72 = arith.constant 0 : index
    %c0_73 = arith.constant 0 : index
    %167 = vector.load %arg17[%c0_71, %c0_72, %c0_73] : memref<1x1x64xf32, #tpu.memory_space<vmem>>, vector<1x1x64xf32>
    %168 = vector.shape_cast %167 : vector<1x1x64xf32> to vector<1x64xf32>
    %169 = vector.broadcast %168 : vector<1x64xf32> to vector<10x64xf32>
    %170 = arith.addf %166, %169 : vector<10x64xf32>
    %171 = vector.shape_cast %170 : vector<10x64xf32> to vector<1x10x64xf32>
    %172 = vector.extract_strided_slice %171 {offsets = [0, 0, 0], sizes = [1, 10, 32], strides = [1, 1, 1]} : vector<1x10x64xf32> to vector<1x10x32xf32>
    %173 = arith.truncf %172 : vector<1x10x32xf32> to vector<1x10x32xbf16>
    %174 = vector.extract_strided_slice %171 {offsets = [0, 0, 32], sizes = [1, 10, 32], strides = [1, 1, 1]} : vector<1x10x64xf32> to vector<1x10x32xf32>
    %175 = arith.truncf %174 : vector<1x10x32xf32> to vector<1x10x32xbf16>
    %176 = vector.extract_strided_slice %161 {offsets = [0, 0, 0], sizes = [1, 8, 8], strides = [1, 1, 1]} : vector<1x8x32xbf16> to vector<1x8x8xbf16>
    %177 = vector.extract_strided_slice %173 {offsets = [0, 0, 0], sizes = [1, 10, 8], strides = [1, 1, 1]} : vector<1x10x32xbf16> to vector<1x10x8xbf16>
    "tpu.trace_start"() <{level = 10 : i32, message = "bqd,bkd->bqk"}> : () -> ()
    %cst_74 = arith.constant dense<0.000000e+00> : vector<1x8x10xf32>
    %178 = tpu.matmul %176, %177, %cst_74 {dimension_numbers = #tpu.dot_dimension_numbers<[2], [2], [1], [1], [0, 0, 0, 1, 1, 1], [0], [0]>} : vector<1x8x8xbf16>, vector<1x10x8xbf16>, vector<1x8x10xf32> -> vector<1x8x10xf32>
    "tpu.trace_stop"() : () -> ()
    %cst_75 = arith.constant 0.353553385 : f32
    %179 = vector.broadcast %cst_75 : f32 to vector<1x8x10xf32>
    %180 = arith.mulf %178, %179 : vector<1x8x10xf32>
    %cst_76 = arith.constant dense<0xFF800000> : vector<1x8xf32>
    %181 = vector.multi_reduction <maximumf>, %180, %cst_76 [2] : vector<1x8x10xf32> to vector<1x8xf32>
    %182 = vector.shape_cast %181 : vector<1x8xf32> to vector<1x8x1xf32>
    %183 = vector.broadcast %182 : vector<1x8x1xf32> to vector<1x8x10xf32>
    %184 = arith.subf %180, %183 : vector<1x8x10xf32>
    %185 = math.exp %184 : vector<1x8x10xf32>
    %cst_77 = arith.constant dense<0.000000e+00> : vector<1x8xf32>
    %186 = vector.multi_reduction <add>, %185, %cst_77 [2] : vector<1x8x10xf32> to vector<1x8xf32>
    %187 = vector.shape_cast %186 : vector<1x8xf32> to vector<1x8x1xf32>
    %188 = vector.broadcast %187 : vector<1x8x1xf32> to vector<1x8x10xf32>
    %189 = arith.divf %185, %188 : vector<1x8x10xf32>
    %190 = arith.truncf %189 : vector<1x8x10xf32> to vector<1x8x10xbf16>
    %191 = vector.extract_strided_slice %175 {offsets = [0, 0, 0], sizes = [1, 10, 8], strides = [1, 1, 1]} : vector<1x10x32xbf16> to vector<1x10x8xbf16>
    "tpu.trace_start"() <{level = 10 : i32, message = "bqk,bkd->bqd"}> : () -> ()
    %cst_78 = arith.constant dense<0.000000e+00> : vector<1x8x8xf32>
    %192 = tpu.matmul %190, %191, %cst_78 {dimension_numbers = #tpu.dot_dimension_numbers<[2], [1], [1], [2], [0, 0, 0, 1, 1, 2], [0], [0]>} : vector<1x8x10xbf16>, vector<1x10x8xbf16>, vector<1x8x8xf32> -> vector<1x8x8xf32>
    "tpu.trace_stop"() : () -> ()
    %193 = vector.extract_strided_slice %161 {offsets = [0, 0, 8], sizes = [1, 8, 8], strides = [1, 1, 1]} : vector<1x8x32xbf16> to vector<1x8x8xbf16>
    %194 = vector.extract_strided_slice %173 {offsets = [0, 0, 8], sizes = [1, 10, 8], strides = [1, 1, 1]} : vector<1x10x32xbf16> to vector<1x10x8xbf16>
    "tpu.trace_start"() <{level = 10 : i32, message = "bqd,bkd->bqk"}> : () -> ()
    %cst_79 = arith.constant dense<0.000000e+00> : vector<1x8x10xf32>
    %195 = tpu.matmul %193, %194, %cst_79 {dimension_numbers = #tpu.dot_dimension_numbers<[2], [2], [1], [1], [0, 0, 0, 1, 1, 1], [0], [0]>} : vector<1x8x8xbf16>, vector<1x10x8xbf16>, vector<1x8x10xf32> -> vector<1x8x10xf32>
    "tpu.trace_stop"() : () -> ()
    %cst_80 = arith.constant 0.353553385 : f32
    %196 = vector.broadcast %cst_80 : f32 to vector<1x8x10xf32>
    %197 = arith.mulf %195, %196 : vector<1x8x10xf32>
    %cst_81 = arith.constant dense<0xFF800000> : vector<1x8xf32>
    %198 = vector.multi_reduction <maximumf>, %197, %cst_81 [2] : vector<1x8x10xf32> to vector<1x8xf32>
    %199 = vector.shape_cast %198 : vector<1x8xf32> to vector<1x8x1xf32>
    %200 = vector.broadcast %199 : vector<1x8x1xf32> to vector<1x8x10xf32>
    %201 = arith.subf %197, %200 : vector<1x8x10xf32>
    %202 = math.exp %201 : vector<1x8x10xf32>
    %cst_82 = arith.constant dense<0.000000e+00> : vector<1x8xf32>
    %203 = vector.multi_reduction <add>, %202, %cst_82 [2] : vector<1x8x10xf32> to vector<1x8xf32>
    %204 = vector.shape_cast %203 : vector<1x8xf32> to vector<1x8x1xf32>
    %205 = vector.broadcast %204 : vector<1x8x1xf32> to vector<1x8x10xf32>
    %206 = arith.divf %202, %205 : vector<1x8x10xf32>
    %207 = arith.truncf %206 : vector<1x8x10xf32> to vector<1x8x10xbf16>
    %208 = vector.extract_strided_slice %175 {offsets = [0, 0, 8], sizes = [1, 10, 8], strides = [1, 1, 1]} : vector<1x10x32xbf16> to vector<1x10x8xbf16>
    "tpu.trace_start"() <{level = 10 : i32, message = "bqk,bkd->bqd"}> : () -> ()
    %cst_83 = arith.constant dense<0.000000e+00> : vector<1x8x8xf32>
    %209 = tpu.matmul %207, %208, %cst_83 {dimension_numbers = #tpu.dot_dimension_numbers<[2], [1], [1], [2], [0, 0, 0, 1, 1, 2], [0], [0]>} : vector<1x8x10xbf16>, vector<1x10x8xbf16>, vector<1x8x8xf32> -> vector<1x8x8xf32>
    "tpu.trace_stop"() : () -> ()
    %210 = vector.extract_strided_slice %161 {offsets = [0, 0, 16], sizes = [1, 8, 8], strides = [1, 1, 1]} : vector<1x8x32xbf16> to vector<1x8x8xbf16>
    %211 = vector.extract_strided_slice %173 {offsets = [0, 0, 16], sizes = [1, 10, 8], strides = [1, 1, 1]} : vector<1x10x32xbf16> to vector<1x10x8xbf16>
    "tpu.trace_start"() <{level = 10 : i32, message = "bqd,bkd->bqk"}> : () -> ()
    %cst_84 = arith.constant dense<0.000000e+00> : vector<1x8x10xf32>
    %212 = tpu.matmul %210, %211, %cst_84 {dimension_numbers = #tpu.dot_dimension_numbers<[2], [2], [1], [1], [0, 0, 0, 1, 1, 1], [0], [0]>} : vector<1x8x8xbf16>, vector<1x10x8xbf16>, vector<1x8x10xf32> -> vector<1x8x10xf32>
    "tpu.trace_stop"() : () -> ()
    %cst_85 = arith.constant 0.353553385 : f32
    %213 = vector.broadcast %cst_85 : f32 to vector<1x8x10xf32>
    %214 = arith.mulf %212, %213 : vector<1x8x10xf32>
    %cst_86 = arith.constant dense<0xFF800000> : vector<1x8xf32>
    %215 = vector.multi_reduction <maximumf>, %214, %cst_86 [2] : vector<1x8x10xf32> to vector<1x8xf32>
    %216 = vector.shape_cast %215 : vector<1x8xf32> to vector<1x8x1xf32>
    %217 = vector.broadcast %216 : vector<1x8x1xf32> to vector<1x8x10xf32>
    %218 = arith.subf %214, %217 : vector<1x8x10xf32>
    %219 = math.exp %218 : vector<1x8x10xf32>
    %cst_87 = arith.constant dense<0.000000e+00> : vector<1x8xf32>
    %220 = vector.multi_reduction <add>, %219, %cst_87 [2] : vector<1x8x10xf32> to vector<1x8xf32>
    %221 = vector.shape_cast %220 : vector<1x8xf32> to vector<1x8x1xf32>
    %222 = vector.broadcast %221 : vector<1x8x1xf32> to vector<1x8x10xf32>
    %223 = arith.divf %219, %222 : vector<1x8x10xf32>
    %224 = arith.truncf %223 : vector<1x8x10xf32> to vector<1x8x10xbf16>
    %225 = vector.extract_strided_slice %175 {offsets = [0, 0, 16], sizes = [1, 10, 8], strides = [1, 1, 1]} : vector<1x10x32xbf16> to vector<1x10x8xbf16>
    "tpu.trace_start"() <{level = 10 : i32, message = "bqk,bkd->bqd"}> : () -> ()
    %cst_88 = arith.constant dense<0.000000e+00> : vector<1x8x8xf32>
    %226 = tpu.matmul %224, %225, %cst_88 {dimension_numbers = #tpu.dot_dimension_numbers<[2], [1], [1], [2], [0, 0, 0, 1, 1, 2], [0], [0]>} : vector<1x8x10xbf16>, vector<1x10x8xbf16>, vector<1x8x8xf32> -> vector<1x8x8xf32>
    "tpu.trace_stop"() : () -> ()
    %227 = vector.extract_strided_slice %161 {offsets = [0, 0, 24], sizes = [1, 8, 8], strides = [1, 1, 1]} : vector<1x8x32xbf16> to vector<1x8x8xbf16>
    %228 = vector.extract_strided_slice %173 {offsets = [0, 0, 24], sizes = [1, 10, 8], strides = [1, 1, 1]} : vector<1x10x32xbf16> to vector<1x10x8xbf16>
    "tpu.trace_start"() <{level = 10 : i32, message = "bqd,bkd->bqk"}> : () -> ()
    %cst_89 = arith.constant dense<0.000000e+00> : vector<1x8x10xf32>
    %229 = tpu.matmul %227, %228, %cst_89 {dimension_numbers = #tpu.dot_dimension_numbers<[2], [2], [1], [1], [0, 0, 0, 1, 1, 1], [0], [0]>} : vector<1x8x8xbf16>, vector<1x10x8xbf16>, vector<1x8x10xf32> -> vector<1x8x10xf32>
    "tpu.trace_stop"() : () -> ()
    %cst_90 = arith.constant 0.353553385 : f32
    %230 = vector.broadcast %cst_90 : f32 to vector<1x8x10xf32>
    %231 = arith.mulf %229, %230 : vector<1x8x10xf32>
    %cst_91 = arith.constant dense<0xFF800000> : vector<1x8xf32>
    %232 = vector.multi_reduction <maximumf>, %231, %cst_91 [2] : vector<1x8x10xf32> to vector<1x8xf32>
    %233 = vector.shape_cast %232 : vector<1x8xf32> to vector<1x8x1xf32>
    %234 = vector.broadcast %233 : vector<1x8x1xf32> to vector<1x8x10xf32>
    %235 = arith.subf %231, %234 : vector<1x8x10xf32>
    %236 = math.exp %235 : vector<1x8x10xf32>
    %cst_92 = arith.constant dense<0.000000e+00> : vector<1x8xf32>
    %237 = vector.multi_reduction <add>, %236, %cst_92 [2] : vector<1x8x10xf32> to vector<1x8xf32>
    %238 = vector.shape_cast %237 : vector<1x8xf32> to vector<1x8x1xf32>
    %239 = vector.broadcast %238 : vector<1x8x1xf32> to vector<1x8x10xf32>
    %240 = arith.divf %236, %239 : vector<1x8x10xf32>
    %241 = arith.truncf %240 : vector<1x8x10xf32> to vector<1x8x10xbf16>
    %242 = vector.extract_strided_slice %175 {offsets = [0, 0, 24], sizes = [1, 10, 8], strides = [1, 1, 1]} : vector<1x10x32xbf16> to vector<1x10x8xbf16>
    "tpu.trace_start"() <{level = 10 : i32, message = "bqk,bkd->bqd"}> : () -> ()
    %cst_93 = arith.constant dense<0.000000e+00> : vector<1x8x8xf32>
    %243 = tpu.matmul %241, %242, %cst_93 {dimension_numbers = #tpu.dot_dimension_numbers<[2], [1], [1], [2], [0, 0, 0, 1, 1, 2], [0], [0]>} : vector<1x8x10xbf16>, vector<1x10x8xbf16>, vector<1x8x8xf32> -> vector<1x8x8xf32>
    "tpu.trace_stop"() : () -> ()
    %244 = tpu.concatenate %192, %209, %226, %243 in 2 : vector<1x8x8xf32>, vector<1x8x8xf32>, vector<1x8x8xf32>, vector<1x8x8xf32> -> vector<1x8x32xf32>
    %245 = vector.shape_cast %244 : vector<1x8x32xf32> to vector<8x32xf32>
    %246 = arith.truncf %245 : vector<8x32xf32> to vector<8x32xbf16>
    %c0_94 = arith.constant 0 : index
    %c0_95 = arith.constant 0 : index
    %c0_96 = arith.constant 0 : index
    %247 = vector.load %arg18[%c0_94, %c0_95, %c0_96] : memref<1x32x32xbf16, #tpu.memory_space<vmem>>, vector<1x32x32xbf16>
    %248 = vector.shape_cast %247 : vector<1x32x32xbf16> to vector<32x32xbf16>
    %cst_97 = arith.constant dense<0.000000e+00> : vector<8x32xf32>
    %249 = tpu.matmul %246, %248, %cst_97 {dimension_numbers = #tpu.dot_dimension_numbers<[1], [0], [0], [1], [0, 0, 1, 1], [], []>} : vector<8x32xbf16>, vector<32x32xbf16>, vector<8x32xf32> -> vector<8x32xf32>
    %c0_98 = arith.constant 0 : index
    %c0_99 = arith.constant 0 : index
    %c0_100 = arith.constant 0 : index
    %250 = vector.load %arg19[%c0_98, %c0_99, %c0_100] : memref<1x1x32xf32, #tpu.memory_space<vmem>>, vector<1x1x32xf32>
    %251 = vector.shape_cast %250 : vector<1x1x32xf32> to vector<1x32xf32>
    %252 = vector.broadcast %251 : vector<1x32xf32> to vector<8x32xf32>
    %253 = arith.addf %249, %252 : vector<8x32xf32>
    %254 = arith.addf %125, %253 : vector<8x32xf32>
    %c0_101 = arith.constant 0 : index
    %c0_102 = arith.constant 0 : index
    %c0_103 = arith.constant 0 : index
    %255 = vector.load %arg8[%c0_101, %c0_102, %c0_103] : memref<1x1x32xf32, #tpu.memory_space<vmem>>, vector<1x1x32xf32>
    %256 = vector.shape_cast %255 : vector<1x1x32xf32> to vector<1x32xf32>
    %c0_104 = arith.constant 0 : index
    %c0_105 = arith.constant 0 : index
    %c0_106 = arith.constant 0 : index
    %257 = vector.load %arg9[%c0_104, %c0_105, %c0_106] : memref<1x1x32xf32, #tpu.memory_space<vmem>>, vector<1x1x32xf32>
    %258 = vector.shape_cast %257 : vector<1x1x32xf32> to vector<1x32xf32>
    %cst_107 = arith.constant dense<0.000000e+00> : vector<8xf32>
    %259 = vector.multi_reduction <add>, %254, %cst_107 [1] : vector<8x32xf32> to vector<8xf32>
    %260 = vector.shape_cast %259 : vector<8xf32> to vector<8x1xf32>
    %cst_108 = arith.constant 3.200000e+01 : f32
    %261 = vector.broadcast %cst_108 : f32 to vector<8x1xf32>
    %262 = arith.divf %260, %261 : vector<8x1xf32>
    %263 = vector.broadcast %262 : vector<8x1xf32> to vector<8x32xf32>
    %264 = arith.subf %254, %263 : vector<8x32xf32>
    %265 = arith.mulf %264, %264 : vector<8x32xf32>
    %cst_109 = arith.constant dense<0.000000e+00> : vector<8xf32>
    %266 = vector.multi_reduction <add>, %265, %cst_109 [1] : vector<8x32xf32> to vector<8xf32>
    %267 = vector.shape_cast %266 : vector<8xf32> to vector<8x1xf32>
    %cst_110 = arith.constant 3.200000e+01 : f32
    %268 = vector.broadcast %cst_110 : f32 to vector<8x1xf32>
    %269 = arith.divf %267, %268 : vector<8x1xf32>
    %270 = vector.broadcast %262 : vector<8x1xf32> to vector<8x32xf32>
    %271 = arith.subf %254, %270 : vector<8x32xf32>
    %cst_111 = arith.constant 9.99999997E-7 : f32
    %272 = vector.broadcast %cst_111 : f32 to vector<8x1xf32>
    %273 = arith.addf %269, %272 : vector<8x1xf32>
    %274 = math.rsqrt %273 : vector<8x1xf32>
    %275 = vector.broadcast %274 : vector<8x1xf32> to vector<8x32xf32>
    %276 = arith.mulf %271, %275 : vector<8x32xf32>
    %277 = vector.broadcast %256 : vector<1x32xf32> to vector<8x32xf32>
    %278 = arith.mulf %276, %277 : vector<8x32xf32>
    %279 = vector.broadcast %258 : vector<1x32xf32> to vector<8x32xf32>
    %280 = arith.addf %278, %279 : vector<8x32xf32>
    %281 = arith.truncf %280 : vector<8x32xf32> to vector<8x32xbf16>
    %cst_112 = arith.constant 0.000000e+00 : f32
    %282 = vector.broadcast %cst_112 : f32 to vector<8x32xf32>
    %c0_113 = arith.constant 0 : index
    %c0_114 = arith.constant 0 : index
    %c0_115 = arith.constant 0 : index
    %283 = vector.load %arg20[%c0_113, %c0_114, %c0_115] : memref<1x32x64xbf16, #tpu.memory_space<vmem>>, vector<1x32x64xbf16>
    %284 = vector.shape_cast %283 : vector<1x32x64xbf16> to vector<32x64xbf16>
    %cst_116 = arith.constant dense<0.000000e+00> : vector<8x64xf32>
    %285 = tpu.matmul %281, %284, %cst_116 {dimension_numbers = #tpu.dot_dimension_numbers<[1], [0], [0], [1], [0, 0, 1, 1], [], []>} : vector<8x32xbf16>, vector<32x64xbf16>, vector<8x64xf32> -> vector<8x64xf32>
    %c0_117 = arith.constant 0 : index
    %c0_118 = arith.constant 0 : index
    %c0_119 = arith.constant 0 : index
    %286 = vector.load %arg21[%c0_117, %c0_118, %c0_119] : memref<1x1x64xf32, #tpu.memory_space<vmem>>, vector<1x1x64xf32>
    %287 = vector.shape_cast %286 : vector<1x1x64xf32> to vector<1x64xf32>
    %288 = vector.broadcast %287 : vector<1x64xf32> to vector<8x64xf32>
    %289 = arith.addf %285, %288 : vector<8x64xf32>
    %cst_120 = arith.constant 0.000000e+00 : f32
    %290 = vector.broadcast %cst_120 : f32 to vector<8x64xf32>
    %291 = arith.maximumf %289, %290 : vector<8x64xf32>
    %292 = arith.truncf %291 : vector<8x64xf32> to vector<8x64xbf16>
    %c0_121 = arith.constant 0 : index
    %c0_122 = arith.constant 0 : index
    %c0_123 = arith.constant 0 : index
    %293 = vector.load %arg22[%c0_121, %c0_122, %c0_123] : memref<1x64x32xbf16, #tpu.memory_space<vmem>>, vector<1x64x32xbf16>
    %294 = vector.shape_cast %293 : vector<1x64x32xbf16> to vector<64x32xbf16>
    %cst_124 = arith.constant dense<0.000000e+00> : vector<8x32xf32>
    %295 = tpu.matmul %292, %294, %cst_124 {dimension_numbers = #tpu.dot_dimension_numbers<[1], [0], [0], [1], [0, 0, 1, 1], [], []>} : vector<8x64xbf16>, vector<64x32xbf16>, vector<8x32xf32> -> vector<8x32xf32>
    %296 = arith.addf %282, %295 : vector<8x32xf32>
    %297 = arith.addf %254, %296 : vector<8x32xf32>
    %c0_125 = arith.constant 0 : index
    %c0_126 = arith.constant 0 : index
    %c0_127 = arith.constant 0 : index
    %298 = vector.load %arg23[%c0_125, %c0_126, %c0_127] : memref<1x1x32xf32, #tpu.memory_space<vmem>>, vector<1x1x32xf32>
    %299 = vector.shape_cast %298 : vector<1x1x32xf32> to vector<1x32xf32>
    %300 = vector.broadcast %299 : vector<1x32xf32> to vector<8x32xf32>
    %301 = arith.addf %297, %300 : vector<8x32xf32>
    %c0_128 = arith.constant 0 : index
    %c0_129 = arith.constant 0 : index
    %302 = vector.load %arg27[%c0_128, %c0_129] : memref<8x32xf32, #tpu.memory_space<vmem>>, vector<8x32xf32>
    tpu.vector_store %arg27[%c0_128, %c0_129], %301 {strides = array<i32>} : memref<8x32xf32, #tpu.memory_space<vmem>>, vector<8x32xf32>,
    %c1_i32 = arith.constant 1 : i32
    %303 = arith.cmpi eq, %arg1, %c1_i32 : i32
    %304 = arith.extui %303 : i1 to i32
    %c0_i32_130 = arith.constant 0 : i32
    %305 = arith.cmpi ne, %304, %c0_i32_130 : i32
    scf.if %305 {
      %c0_131 = arith.constant 0 : index
      %c0_132 = arith.constant 0 : index
      %306 = vector.load %arg24[%c0_131, %c0_132] : memref<1x32xf32, #tpu.memory_space<vmem>>, vector<1x32xf32>
      %c0_133 = arith.constant 0 : index
      %c0_134 = arith.constant 0 : index
      %307 = vector.load %arg25[%c0_133, %c0_134] : memref<1x32xf32, #tpu.memory_space<vmem>>, vector<1x32xf32>
      %cst_135 = arith.constant dense<0.000000e+00> : vector<8xf32>
      %308 = vector.multi_reduction <add>, %301, %cst_135 [1] : vector<8x32xf32> to vector<8xf32>
      %309 = vector.shape_cast %308 : vector<8xf32> to vector<8x1xf32>
      %cst_136 = arith.constant 3.200000e+01 : f32
      %310 = vector.broadcast %cst_136 : f32 to vector<8x1xf32>
      %311 = arith.divf %309, %310 : vector<8x1xf32>
      %312 = vector.broadcast %311 : vector<8x1xf32> to vector<8x32xf32>
      %313 = arith.subf %301, %312 : vector<8x32xf32>
      %314 = arith.mulf %313, %313 : vector<8x32xf32>
      %cst_137 = arith.constant dense<0.000000e+00> : vector<8xf32>
      %315 = vector.multi_reduction <add>, %314, %cst_137 [1] : vector<8x32xf32> to vector<8xf32>
      %316 = vector.shape_cast %315 : vector<8xf32> to vector<8x1xf32>
      %cst_138 = arith.constant 3.200000e+01 : f32
      %317 = vector.broadcast %cst_138 : f32 to vector<8x1xf32>
      %318 = arith.divf %316, %317 : vector<8x1xf32>
      %319 = vector.broadcast %311 : vector<8x1xf32> to vector<8x32xf32>
      %320 = arith.subf %301, %319 : vector<8x32xf32>
      %cst_139 = arith.constant 9.99999997E-7 : f32
      %321 = vector.broadcast %cst_139 : f32 to vector<8x1xf32>
      %322 = arith.addf %318, %321 : vector<8x1xf32>
      %323 = math.rsqrt %322 : vector<8x1xf32>
      %324 = vector.broadcast %323 : vector<8x1xf32> to vector<8x32xf32>
      %325 = arith.mulf %320, %324 : vector<8x32xf32>
      %326 = vector.broadcast %306 : vector<1x32xf32> to vector<8x32xf32>
      %327 = arith.mulf %325, %326 : vector<8x32xf32>
      %328 = vector.broadcast %307 : vector<1x32xf32> to vector<8x32xf32>
      %329 = arith.addf %327, %328 : vector<8x32xf32>
      %c0_140 = arith.constant 0 : index
      %c0_141 = arith.constant 0 : index
      %330 = vector.load %arg26[%c0_140, %c0_141] : memref<8x32xf32, #tpu.memory_space<vmem>>, vector<8x32xf32>
      tpu.vector_store %arg26[%c0_140, %c0_141], %329 {strides = array<i32>} : memref<8x32xf32, #tpu.memory_space<vmem>>, vector<8x32xf32>,
    } else {
    }
    return
  }
  func.func @transform_0(%arg0: i32, %arg1: i32) -> (i32, i32) {
    %c0_i32 = arith.constant 0 : i32
    %c0_i32_0 = arith.constant 0 : i32
    return %arg0, %c0_i32 : i32, i32
  }
  func.func @transform_1(%arg0: i32, %arg1: i32) -> (i32, i32, i32) {
    %c0_i32 = arith.constant 0 : i32
    %c0_i32_0 = arith.constant 0 : i32
    %c0_i32_1 = arith.constant 0 : i32
    return %arg0, %c0_i32, %c0_i32_0 : i32, i32, i32
  }
  func.func @transform_2(%arg0: i32, %arg1: i32) -> (i32, i32, i32) {
    %c0_i32 = arith.constant 0 : i32
    %c0_i32_0 = arith.constant 0 : i32
    %c0_i32_1 = arith.constant 0 : i32
    return %arg1, %c0_i32, %c0_i32_0 : i32, i32, i32
  }
  func.func @transform_3(%arg0: i32, %arg1: i32) -> (i32, i32, i32) {
    %c0_i32 = arith.constant 0 : i32
    %c0_i32_0 = arith.constant 0 : i32
    %c0_i32_1 = arith.constant 0 : i32
    return %arg1, %c0_i32, %c0_i32_0 : i32, i32, i32
  }
  func.func @transform_4(%arg0: i32, %arg1: i32) -> (i32, i32, i32) {
    %c0_i32 = arith.constant 0 : i32
    %c0_i32_0 = arith.constant 0 : i32
    %c0_i32_1 = arith.constant 0 : i32
    return %arg1, %c0_i32, %c0_i32_0 : i32, i32, i32
  }
  func.func @transform_5(%arg0: i32, %arg1: i32) -> (i32, i32, i32) {
    %c0_i32 = arith.constant 0 : i32
    %c0_i32_0 = arith.constant 0 : i32
    %c0_i32_1 = arith.constant 0 : i32
    return %arg1, %c0_i32, %c0_i32_0 : i32, i32, i32
  }
  func.func @transform_6(%arg0: i32, %arg1: i32) -> (i32, i32, i32) {
    %c0_i32 = arith.constant 0 : i32
    %c0_i32_0 = arith.constant 0 : i32
    %c0_i32_1 = arith.constant 0 : i32
    return %arg1, %c0_i32, %c0_i32_0 : i32, i32, i32
  }
  func.func @transform_7(%arg0: i32, %arg1: i32) -> (i32, i32, i32) {
    %c0_i32 = arith.constant 0 : i32
    %c0_i32_0 = arith.constant 0 : i32
    %c0_i32_1 = arith.constant 0 : i32
    return %arg1, %c0_i32, %c0_i32_0 : i32, i32, i32
  }
  func.func @transform_8(%arg0: i32, %arg1: i32) -> (i32, i32, i32) {
    %c0_i32 = arith.constant 0 : i32
    %c0_i32_0 = arith.constant 0 : i32
    %c0_i32_1 = arith.constant 0 : i32
    return %arg1, %c0_i32, %c0_i32_0 : i32, i32, i32
  }
  func.func @transform_9(%arg0: i32, %arg1: i32) -> (i32, i32, i32) {
    %c0_i32 = arith.constant 0 : i32
    %c0_i32_0 = arith.constant 0 : i32
    %c0_i32_1 = arith.constant 0 : i32
    return %arg1, %c0_i32, %c0_i32_0 : i32, i32, i32
  }
  func.func @transform_10(%arg0: i32, %arg1: i32) -> (i32, i32, i32) {
    %c0_i32 = arith.constant 0 : i32
    %c0_i32_0 = arith.constant 0 : i32
    %c0_i32_1 = arith.constant 0 : i32
    return %arg1, %c0_i32, %c0_i32_0 : i32, i32, i32
  }
  func.func @transform_11(%arg0: i32, %arg1: i32) -> (i32, i32, i32) {
    %c0_i32 = arith.constant 0 : i32
    %c0_i32_0 = arith.constant 0 : i32
    %c0_i32_1 = arith.constant 0 : i32
    return %arg1, %c0_i32, %c0_i32_0 : i32, i32, i32
  }
  func.func @transform_12(%arg0: i32, %arg1: i32) -> (i32, i32, i32) {
    %c0_i32 = arith.constant 0 : i32
    %c0_i32_0 = arith.constant 0 : i32
    %c0_i32_1 = arith.constant 0 : i32
    return %arg1, %c0_i32, %c0_i32_0 : i32, i32, i32
  }
  func.func @transform_13(%arg0: i32, %arg1: i32) -> (i32, i32, i32) {
    %c0_i32 = arith.constant 0 : i32
    %c0_i32_0 = arith.constant 0 : i32
    %c0_i32_1 = arith.constant 0 : i32
    return %arg1, %c0_i32, %c0_i32_0 : i32, i32, i32
  }
  func.func @transform_14(%arg0: i32, %arg1: i32) -> (i32, i32, i32) {
    %c0_i32 = arith.constant 0 : i32
    %c0_i32_0 = arith.constant 0 : i32
    %c0_i32_1 = arith.constant 0 : i32
    return %arg1, %c0_i32, %c0_i32_0 : i32, i32, i32
  }
  func.func @transform_15(%arg0: i32, %arg1: i32) -> (i32, i32, i32) {
    %c0_i32 = arith.constant 0 : i32
    %c0_i32_0 = arith.constant 0 : i32
    %c0_i32_1 = arith.constant 0 : i32
    return %arg1, %c0_i32, %c0_i32_0 : i32, i32, i32
  }
  func.func @transform_16(%arg0: i32, %arg1: i32) -> (i32, i32, i32) {
    %c0_i32 = arith.constant 0 : i32
    %c0_i32_0 = arith.constant 0 : i32
    %c0_i32_1 = arith.constant 0 : i32
    return %arg1, %c0_i32, %c0_i32_0 : i32, i32, i32
  }
  func.func @transform_17(%arg0: i32, %arg1: i32) -> (i32, i32, i32) {
    %c0_i32 = arith.constant 0 : i32
    %c0_i32_0 = arith.constant 0 : i32
    %c0_i32_1 = arith.constant 0 : i32
    return %arg1, %c0_i32, %c0_i32_0 : i32, i32, i32
  }
  func.func @transform_18(%arg0: i32, %arg1: i32) -> (i32, i32, i32) {
    %c0_i32 = arith.constant 0 : i32
    %c0_i32_0 = arith.constant 0 : i32
    %c0_i32_1 = arith.constant 0 : i32
    return %arg1, %c0_i32, %c0_i32_0 : i32, i32, i32
  }
  func.func @transform_19(%arg0: i32, %arg1: i32) -> (i32, i32, i32) {
    %c0_i32 = arith.constant 0 : i32
    %c0_i32_0 = arith.constant 0 : i32
    %c0_i32_1 = arith.constant 0 : i32
    return %arg1, %c0_i32, %c0_i32_0 : i32, i32, i32
  }
  func.func @transform_20(%arg0: i32, %arg1: i32) -> (i32, i32, i32) {
    %c0_i32 = arith.constant 0 : i32
    %c0_i32_0 = arith.constant 0 : i32
    %c0_i32_1 = arith.constant 0 : i32
    return %arg1, %c0_i32, %c0_i32_0 : i32, i32, i32
  }
  func.func @transform_21(%arg0: i32, %arg1: i32) -> (i32, i32, i32) {
    %c0_i32 = arith.constant 0 : i32
    %c0_i32_0 = arith.constant 0 : i32
    %c0_i32_1 = arith.constant 0 : i32
    return %arg1, %c0_i32, %c0_i32_0 : i32, i32, i32
  }
  func.func @transform_22(%arg0: i32, %arg1: i32) -> (i32, i32) {
    %c0_i32 = arith.constant 0 : i32
    %c0_i32_0 = arith.constant 0 : i32
    %c0_i32_1 = arith.constant 0 : i32
    return %c0_i32, %c0_i32_0 : i32, i32
  }
  func.func @transform_23(%arg0: i32, %arg1: i32) -> (i32, i32) {
    %c0_i32 = arith.constant 0 : i32
    %c0_i32_0 = arith.constant 0 : i32
    %c0_i32_1 = arith.constant 0 : i32
    return %c0_i32, %c0_i32_0 : i32, i32
  }
  func.func @transform_24(%arg0: i32, %arg1: i32) -> (i32, i32) {
    %c0_i32 = arith.constant 0 : i32
    %c0_i32_0 = arith.constant 0 : i32
    return %arg0, %c0_i32 : i32, i32
  }
}

</mosaic_0001>

<bundles_post_ra>
// kernel: decoder_forward.1
= control target key start
LH: loop header
LB: loop body
LE: loop exit
PB: predicated region body
PF: predicated region fallthrough
CT: control target
= control target key end

     0   :  { %s4154_s0 = inlined_call_operand.vmem [shape: f32[16,32], index: 0, kind: input, shape index: {}]   ;;  %s4155_s1 = inlined_call_operand.vmem [shape: bf16[2,10,32], index: 1, kind: input, shape index: {}]   ;;  %s4156_s2 = inlined_call_operand.vmem [shape: f32[2,1,32], index: 2, kind: input, shape index: {}]   ;;  %s4157_s3 = inlined_call_operand.vmem [shape: f32[2,1,32], index: 3, kind: input, shape index: {}]   ;;  %s4158_s4 = inlined_call_operand.vmem [shape: f32[2,1,32], index: 4, kind: input, shape index: {}]   ;;  %s4159_s5 = inlined_call_operand.vmem [shape: f32[2,1,32], index: 5, kind: input, shape index: {}]   ;;  %s4160_s6 = inlined_call_operand.vmem [shape: f32[2,1,32], index: 6, kind: input, shape index: {}]   ;;  %s4161_s7 = inlined_call_operand.vmem [shape: f32[2,1,32], index: 7, kind: input, shape index: {}]   ;;  %s4162_s8 = inlined_call_operand.vmem [shape: bf16[2,32,96], index: 8, kind: input, shape index: {}]   ;;  %s4163_s9 = inlined_call_operand.vmem [shape: f32[2,1,96], index: 9, kind: input, shape index: {}]   ;;  %s4164_s10 = inlined_call_operand.vmem [shape: bf16[2,32,32], index: 10, kind: input, shape index: {}]   ;;  %s4165_s11 = inlined_call_operand.vmem [shape: f32[2,1,32], index: 11, kind: input, shape index: {}]   ;;  %s4166_s12 = inlined_call_operand.vmem [shape: bf16[2,32,32], index: 12, kind: input, shape index: {}]   ;;  %s4167_s13 = inlined_call_operand.vmem [shape: f32[2,1,32], index: 13, kind: input, shape index: {}]   ;;  %s4168_s14 = inlined_call_operand.vmem [shape: bf16[2,32,64], index: 14, kind: input, shape index: {}]   ;;  %s4169_s15 = inlined_call_operand.vmem [shape: f32[2,1,64], index: 15, kind: input, shape index: {}]   ;;  %s4170_s16 = inlined_call_operand.vmem [shape: bf16[2,32,32], index: 16, kind: input, shape index: {}]   ;;  %s4171_s17 = inlined_call_operand.vmem [shape: f32[2,1,32], index: 17, kind: input, shape index: {}]   ;;  %s4172_s18 = inlined_call_operand.vmem [shape: bf16[2,32,64], index: 18, kind: input, shape index: {}]   ;;  %s4173_s19 = inlined_call_operand.vmem [shape: f32[2,1,64], index: 19, kind: input, shape index: {}]   ;;  %s4174_s20 = inlined_call_operand.vmem [shape: bf16[2,64,32], index: 20, kind: input, shape index: {}]   ;;  %s4175_s21 = inlined_call_operand.vmem [shape: f32[2,1,32], index: 21, kind: input, shape index: {}]   ;;  %s4176_s22 = inlined_call_operand.vmem [shape: f32[1,32], index: 22, kind: input, shape index: {}]   ;;  %s4177_s23 = inlined_call_operand.vmem [shape: f32[1,32], index: 23, kind: input, shape index: {}]   ;;  %s4178_s24 = inlined_call_operand.hbm [shape: f32[16,32], index: 24, kind: output, shape index: {}]  }
   0x1   :  { %4195 = sst [smem:[#allocation20_spill]] %s4154_s0 }
   0x2   :  { %4196 = sst [smem:[#allocation21_spill]] %s4155_s1 }
   0x3   :  { %4197 = sst [smem:[#allocation22_spill]] %s4156_s2 }
   0x4   :  { %4198 = sst [smem:[#allocation23_spill]] %s4157_s3 }
   0x5   :  { %4199 = sst [smem:[#allocation24_spill]] %s4158_s4 }
   0x6   :  { %4200 = sst [smem:[#allocation25_spill]] %s4159_s5 }
   0x7   :  { %4201 = sst [smem:[#allocation26_spill]] %s4160_s6 }
   0x8   :  { %4202 = sst [smem:[#allocation27_spill]] %s4161_s7 }
   0x9   :  { %4203 = sst [smem:[#allocation28_spill]] %s4162_s8 }
   0xa   :  { %4204 = sst [smem:[#allocation29_spill]] %s4164_s10 }
   0xb   :  { %4205 = sst [smem:[#allocation30_spill]] %s4166_s12 }
   0xc   :  { %4206 = sst [smem:[#allocation31_spill]] %s4167_s13 }
   0xd   :  { %4207 = sst [smem:[#allocation32_spill]] %s4168_s14 }
   0xe   :  { %4208 = sst [smem:[#allocation33_spill]] %s4169_s15 }
   0xf   :  { %4209 = sst [smem:[#allocation34_spill]] %s4170_s16 }
  0x10   :  { %4210 = sst [smem:[#allocation35_spill]] %s4171_s17 }
  0x11   :  { %4211 = sst [smem:[#allocation36_spill]] %s4172_s18 }
  0x12   :  { %4212 = sst [smem:[#allocation37_spill]] %s4173_s19 }
  0x13   :  { %4213 = sst [smem:[#allocation38_spill]] %s4174_s20 }
  0x14   :  { %4214 = sst [smem:[#allocation39_spill]] %s4175_s21 }
  0x15   :  { %4215 = sst [smem:[#allocation40_spill]] %s4176_s22 }
  0x16   :  { %4216 = sst [smem:[#allocation41_spill]] %s4177_s23 }
  0x17   :  { %4217 = sst [smem:[#allocation42_spill]] %s4178_s24 }
  0x18   :  { %29 = vsyncpa [#allocation4], 0 }
  0x19   :  { %31 = vsyncpa [#allocation4 + $0x1], 0  ;;  %s3624_s5 = smov 0   ;;  %s3626_s26 = smov 0  }
  0x1a   :  { %s3628_s27 = smov 0   ;;  %s3630_s28 = smov 0  }
  0x1b   :  { %s3632_s6 = smov 0   ;;  %s3634_s2 = smov 0  }
  0x1c   :  { %s3636_s29 = smov 0   ;;  %s3638_s0 = smov 0  }
  0x1d LB: > { %4218 = sst [smem:[#allocation6_spill]] %s3452_s5  ;;  %s2939_s7 = sadd.s32 4294967295, %s3480_s0   ;;  %s3480_s0 = sphi %s3638_s0, %s37_s0   ;;  %s3476_s29 = sphi %s3636_s29, %s4294_s29   ;;  %s3472_s2 = sphi %s3634_s2, %s4293_s2   ;;  %s3468_s6 = sphi %s3632_s6, %s4292_s6   ;;  %s3464_s28 = sphi %s3630_s28, %s4291_s28   ;;  %s3460_s27 = sphi %s3628_s27, %s4290_s27   ;;  %s3456_s26 = sphi %s3626_s26, %s4289_s26   ;;  %s3452_s5 = sphi %s3624_s5, %s4288_s5  }
  0x1e   : > { %4219 = sst [smem:[#allocation7_spill]] %s3456_s26  ;;  %s2940_s30 = sadd.s32 4294967294, %s3480_s0  }
  0x1f   : > { %4220 = sst [smem:[#allocation8_spill]] %s3460_s27  ;;  %s46_s3 = sadd.s32 1, %s3472_s2 }
  0x20   : > { %4221 = sst [smem:[#allocation9_spill]] %s3464_s28  ;;  %p47_p0 = scmp.ge.s32.totalorder %s46_s3, 2 }
  0x21   : > { %4222 = sst [smem:[#allocation10_spill]] %s3468_s6  ;;  %s49_s25 = sadd.s32 1, %s3476_s29 }
  0x22   : > { %4223 = sst [smem:[#allocation11_spill]] %s3472_s2  ;;  %p680_p1 = scmp.ne.s32.totalorder %s3460_s27, %s3456_s26 }
  0x23   : > { %4224 = sst [smem:[#allocation12_spill]] %s3476_s29  ;;  %p681_p2 = scmp.eq.s32.totalorder %s2939_s7, 3 }
  0x24   : > { %4225 = sst [smem:[#allocation13_spill]] %s3480_s0  ;;  %s4296_s3 = smov (%p47_p0, %s46_s3), 0 }
  0x25   : > { %4226 = sst [smem:[#allocation14_spill]] %s4296_s3  ;;  %s4298_s25 = smov (!%p47_p0, %s49_s25), %s3476_s29 }
  0x26   : > { %p3673_p3 = por %p681_p2, %p680_p1  ;;  %p686_p4 = scmp.ne.s32.totalorder %s3456_s26, %s3452_s5 }
  0x27   : > { %p51_p5 = scmp.ge.s32.totalorder %s4298_s25, 2  ;;  %p687_p6 = scmp.eq.s32.totalorder %s2940_s30, 3 }
  0x28   : > { %s4227_s8 = scalar_select %p3673_p3, 1, 0 }
  0x29   : > { %p2943_p7 = scmp.ge.s32.totalorder %s3480_s0, 1  ;;  %p860_p8 = scmp.lt.s32.totalorder %s3480_s0, 5 }
  0x2a   : > { %4228 = sst [smem:[#allocation15_spill]] %s4227_s8  ;;  %s4300_s25 = smov (%p51_p5, %s4298_s25), 0 }
  0x2b   : > { %4229 = sst [smem:[#allocation16_spill]] %s4300_s25  ;;  %p3683_p9 = por %p687_p6, %p686_p4 }
  0x2c   : > { %p861_p10 = pnand %p2943_p7, %p860_p8  ;;  %s667_s1 = ssub.s32 %s3476_s29, %s4300_s25 }
  0x2d   : > { %s4230_s4 = scalar_select %p3683_p9, 1, 0 }
  0x2e   : > { %s670_s7 = sadd.s32 1, %s3460_s27  ;;  %p668_p11 = scmp.eq.s32.totalorder %s667_s1, 0 }
  0x2f   : > { %4231 = sst [smem:[#allocation17_spill]] %s4230_s4  ;;  %864 = sbr.rel (%p861_p10) target bundleno = 4737 (0x1281), region = 116 }
  0x30   : > { %s3691_s3 = scalar_select %p668_p11, %s3460_s27, %s670_s7  }
  0x32   : > { %4232 = sst [smem:[#allocation18_spill]] %s3691_s3 }
  0x36   : > { %s4184_s30 = sand.u32 1, %s3456_s26   ;;  %p1004_p12 = scmp.lt.s32.totalorder %s3468_s6, 1 }
  0x37   : > { %s3697_s2 = sshll.u32 %s4184_s30, 3  ;;  %p1013_p13 = scmp.lt.s32.totalorder %s3464_s28, 1 }
  0x38   : > { %s1005_s4 = scalar_select %p1004_p12, %s3468_s6, 1 }
  0x39   : > { %s3702_s5 = scalar_select %p1013_p13, %s3464_s28, 1 }
  0x3a   : > { %s2945_s1 = sshll.u32 %s1005_s4, 3  ;;  %s4233_s29 = sld [smem:[#allocation20_spill]] }
  0x3b   : > { %s4234_s0 = sld [smem:[#allocation21_spill]]  ;;  %s3024_s21 = sshll.u32 %s3702_s5, 4 }
  0x3c   : > { %s4242_s10 = sld [smem:[#allocation29_spill]]  ;;  %s4243_s12 = sld [smem:[#allocation30_spill]] }
  0x3d   : > { %s4245_s14 = sld [smem:[#allocation32_spill]]  ;;  %s4247_s16 = sld [smem:[#allocation34_spill]] }
  0x3e   : > { %s4249_s18 = sld [smem:[#allocation35_spill]]  ;;  %s4250_s19 = sld [smem:[#allocation36_spill]] }
  0x3f   : > { %s3030_s7 = sshll.u32 %s3702_s5, 5  ;;  %s4252_s15 = sld [smem:[#allocation38_spill]] }
  0x40   : > { %s1007_s30 = scalar_lea.vmem %s4233_s29, %s2945_s1  ;;  %s4241_s29 = sld [smem:[#allocation28_spill]] }
  0x41   : > { %s3710_s24 = scalar_lea.vmem %s4234_s0, %s2945_s1  ;;  %s4254_s8 = sld [smem:[#allocation9_spill]] }
  0x42   : > { %s3749_s3 = scalar_lea.vmem %s4242_s10, %s3024_s21  ;;  %s3758_s20 = scalar_lea.vmem %s4243_s12, %s3024_s21 }
  0x43   : > { %s3767_s27 = scalar_lea.vmem %s4245_s14, %s3024_s21  ;;  %s3776_s23 = scalar_lea.vmem %s4247_s16, %s3024_s21 }
  0x44   : > { %4248 = sst [smem:[#allocation19_spill]] %s3776_s23  ;;  %s1070_s10 = scalar_lea.vmem %s4249_s18, %s3702_s5 }
  0x45   : > { %s3785_s12 = scalar_lea.vmem %s4250_s19, %s3024_s21  ;;  %s4251_s14 = sld [smem:[#allocation37_spill]] }
  0x46   : > { %s3744_s17 = scalar_lea.vmem %s4241_s29, %s3024_s21  ;;  %s3795_s1 = scalar_lea.vmem %s4252_s15, %s3030_s7 }
  0x47   : > { %s4253_s23 = sld [smem:[#allocation39_spill]]  ;;  %s1003_s18 = scalar_lea.vmem [#allocation3], %s3697_s2 }
  0x48   : > { %p2962_p0 = scmp.ne.s32.totalorder %s4254_s8, 0 }
  0x49   : > { %v1092_v0 = vld [vmem:[%s1007_s30] sm:$0xff] (!%p2962_p0)  ;;  %vm1093_vm0 = vcmask (!%p2962_p0), 261120  }
  0x4a   : > { %1091 = sbr.rel (%p2962_p0) target bundleno = 81 (0x51), region = 120  ;;  %1094 = vst.msk [vmem:[#allocation2] sm:$0xff] (!%p2962_p0), %vm1093_vm0, %v1092_v0 }
  0x4b   : > { %s1078_s13 = scalar_lea.vmem %s4251_s14, %s3702_s5 }
  0x4d   : > { %s1086_s22 = scalar_lea.vmem %s4253_s23, %s3702_s5 }
  0x51 PF: > { %v3803_v1 = vld [vmem:[#allocation2] sm:$0xff]  ;;  %vm1098_vm1 = vcmask 261120   ;;  %v3482_v9 = vmov 0.0   ;;  %vm3483_vm2 = vmmov 0   ;;  %v3330_v10 = vld [vmem:[%s3744_s17 + $0x8] sm:$0xff]   ;;  %s4255_s16 = sld [smem:[#allocation22_spill]]  ;;  %s4259_s28 = scalar_lea.vmem %s4163_s9, %s3702_s5 }
  0x52   : > { %v1099_v2 = vsel %vm1098_vm1, %v3803_v1, 0.0  ;;  %v3329_v8 = vld [vmem:[%s3744_s17] sm:$0xff]   ;;  %3086 = vmatprep.subr.bf16.mxu1 %v3482_v9  ;;  %3090 = vmatprep.mubr.msk.bf16.mxu1 %vm3483_vm2, %v3482_v9  ;;  %s4257_s17 = sld [smem:[#allocation23_spill]]  ;;  %s3484_s4 = smov 120   ;;  %vm1198_vm3 = vcmask 64512   ;;  %vm1263_vm4 = vcmask 1043456  }
  0x53   : > { %1100 = vadd.xlane.f32.xlu0 %v1099_v2  ;;  %3087 = vmatpush3.bf16.msra.mxu1 %v3329_v8  ;;  %v2965_v21 = vld [vmem:[%s4259_s28] ss:$0 sm:$0xff]  ;;  %s3485_s29 = smov 96   ;;  %s3486_s7 = smov 88   ;;  %vm1653_vm5 = vcmask 130048   ;;  %vm1655_vm6 = vcmask 195584  }
  0x54   : > { %3100 = vmatprep.subr.bf16.mxu0 %v3482_v9  ;;  %3088 = vmatprep.subr.bf16.mxu1 %v3482_v9  ;;  %s3487_s0 = smov 80   ;;  %s3488_s6 = smov 112   ;;  %vm1944_vm7 = vcmask 80896   ;;  %vm1963_vm8 = vcmask 1044480   ;;  %vm2554_vm9 = vcmask 523264  }
  0x55   : > { %3102 = vmatprep.mubr.msk.bf16.mxu0 %vm3483_vm2, %v3482_v9  ;;  %s3489_s8 = smov 72   ;;  %s3490_s14 = smov 104  }
  0x56   : > { %s3491_s15 = smov 64   ;;  %s3494_s25 = smov 40  }
  0x57   : > { %3089 = vmatpush3.bf16.msra.mxu1 %v3330_v10  ;;  %s4256_s30 = scalar_lea.vmem %s4255_s16, %s3702_s5  ;;  %s3492_s16 = smov 56  }
  0x58   : > { %3094 = vmatprep.subr.bf16.mxu1 %v3482_v9  ;;  %v2963_v15 = vld [vmem:[%s4256_s30] ss:$0 sm:$0xff]  ;;  %s4258_s23 = scalar_lea.vmem %s4257_s17, %s3702_s5  ;;  %s3493_s30 = smov 48  }
  0x59   : > { %v2964_v17 = vld [vmem:[%s4258_s23] ss:$0 sm:$0xff]  ;;  %s3495_s21 = smov 8   ;;  %s3496_s17 = smov 16  }
  0x5a   : > { %s3497_s23 = smov 24   ;;  %s4260_s26 = scalar_lea.vmem %s4165_s11, %s3702_s5 }
  0x5b   : > { %s4261_s28 = sld [smem:[#allocation24_spill]] }
  0xe0   : > { %v1101_v3 = vpop.xlane.xlu0 %1100 }
  0xe1   : > { %v1103_v4 = vmul.f32 0.03125, %v1101_v3 }
  0xe3   : > { %v1104_v5 = vsub.f32 %v3803_v1, %v1103_v4 }
  0xe5   : > { %v1105_v6 = vmul.f32 %v1104_v5, %v1104_v5 }
  0xe7   : > { %v1106_v7 = vsel %vm1098_vm1, %v1105_v6, 0.0 }
  0xe8   : > { %1107 = vadd.xlane.f32.xlu0 %v1106_v7 }
 0x175   : > { %v1108_v11 = vpop.xlane.xlu0 %1107 }
 0x176   : > { %v1109_v12 = vmul.f32 0.03125, %v1108_v11 }
 0x178   : > { %v1110_v13 = vadd.f32 1e-06, %v1109_v12 }
 0x17a   : > { %3346 = vrsqrt.f32 %v1110_v13 }
 0x184   : > { %v3347_v14 = vpop.eup %3346 }
 0x185   : > { %v1112_v16 = vmul.f32 %v3347_v14, %v1104_v5 }
 0x187   : > { %v1119_v18 = vmul.f32 %v2963_v15, %v1112_v16 }
 0x189   : > { %v1126_v19 = vadd.f32 %v2964_v17, %v1119_v18 }
 0x18b   : > { %v1127_v20 = vpack.c.bf16 %v1126_v19, %v1126_v19 }
 0x18d   : > { %3091 = vmatmul.mubr.msk.bf16.vlgmr.msra.gmra.mrb[0].mxu1 %vm1098_vm1, %v1127_v20 }
 0x18e   : > { %3096 = vmatprep.mubr.msk.bf16.mxu1 %vm3483_vm2, %v3482_v9 }
 0x260   : > { %v1188_v22 = vpop.f32.mrb[0].mxu1 }
 0x261   : > { %v1189_v23 = vadd.f32 %v2965_v21, %v1188_v22  ;;  %v3092_v24 = vpop.f32.mrb[1].mxu1 }
 0x262   : > { %v1191_v25 = vpop.f32.mrb[2].mxu1 }
 0x263   : > { %v3837_v26 = vpack.c.bf16 %v1189_v23, %v1189_v23  ;;  %v3093_v27 = vpop.f32.mrb[3].mxu1 }
 0x265   : > { %1307 = vrot.lane.b32.xlu0 %v3837_v26, %s3484_s4  ;;  %1196 = vrot.lane.b32.xlu1 %v3837_v26, %s3485_s29 }
 0x269   : > { %1309 = vrot.lane.b32.xlu1 %v3837_v26, %s3486_s7 }
 0x26d   : > { %1420 = vrot.lane.b32.xlu1 %v3837_v26, %s3487_s0 }
 0x271   : > { %1418 = vrot.lane.b32.xlu1 %v3837_v26, %s3488_s6 }
 0x275   : > { %1531 = vrot.lane.b32.xlu1 %v3837_v26, %s3489_s8 }
 0x279   : > { %1529 = vrot.lane.b32.xlu1 %v3837_v26, %s3490_s14 }
 0x2d7   : > { %v1197_v28 = vpop.permute.xlu1 %1196  ;;  %v1308_v33 = vpop.permute.xlu0 %1307 }
 0x2d8   : > { %v1203_v29 = vsel %vm1198_vm3, %v1197_v28, 0 }
 0x2d9   : > { %3095 = vmatpush3.bf16.xpose.msra.mxu1 %v1203_v29 }
 0x2da   : > { %3106 = vmatprep.subr.bf16.mxu1 %v3482_v9 }
 0x2db   : > { %v1310_v30 = vpop.permute.xlu1 %1309 }
 0x2dc   : > { %v1315_v31 = vsel %vm1198_vm3, %v1310_v30, 0 }
 0x2df   : > { %v1421_v32 = vpop.permute.xlu1 %1420 }
 0x2e0   : > { %3097 = vmatmul.mubr.msk.bf16.vlgmr.msra.gmra.mrb[4].mxu1 %vm1198_vm3, %v3837_v26  ;;  %v1426_v35 = vsel %vm1198_vm3, %v1421_v32, 0 }
 0x2e1   : > { %3107 = vmatpush3.bf16.xpose.msra.mxu1 %v1315_v31  ;;  %3108 = vmatprep.mubr.msk.bf16.mxu1 %vm3483_vm2, %v3482_v9 }
 0x2e2   : > { %3118 = vmatprep.subr.bf16.mxu1 %v3482_v9 }
 0x2e3   : > { %v1419_v34 = vpop.permute.xlu1 %1418 }
 0x2e7   : > { %v1532_v36 = vpop.permute.xlu1 %1531 }
 0x2e8   : > { %3109 = vmatmul.mubr.msk.bf16.vlgmr.msra.gmra.mrb[8].mxu1 %vm1198_vm3, %v1308_v33  ;;  %v1537_v37 = vsel %vm1198_vm3, %v1532_v36, 0 }
 0x2e9   : > { %3119 = vmatpush3.bf16.xpose.msra.mxu1 %v1426_v35  ;;  %3120 = vmatprep.mubr.msk.bf16.mxu1 %vm3483_vm2, %v3482_v9 }
 0x2ea   : > { %3130 = vmatprep.subr.bf16.mxu1 %v3482_v9 }
 0x2eb   : > { %v1530_v38 = vpop.permute.xlu1 %1529 }
 0x2f0   : > { %3121 = vmatmul.mubr.msk.bf16.vlgmr.msra.gmra.mrb[12].mxu1 %vm1198_vm3, %v1419_v34 }
 0x2f1   : > { %3131 = vmatpush3.bf16.xpose.msra.mxu1 %v1537_v37  ;;  %3132 = vmatprep.mubr.msk.bf16.mxu1 %vm3483_vm2, %v3482_v9 }
 0x2f2   : > { %3142 = vmatprep.subr.bf16.mxu1 %v3482_v9 }
 0x2f8   : > { %3133 = vmatmul.mubr.msk.bf16.vlgmr.msra.gmra.mrb[16].mxu1 %vm1198_vm3, %v1530_v38 }
 0x2f9   : > { %3146 = vmatprep.mubr.msk.bf16.mxu1 %vm3483_vm2, %v3482_v9 }
 0x3b3   : > { %v1239_v39 = vpop.f32.mrb[4].mxu1 }
 0x3b4   : > { %v1245_v40 = vmul.f32 0.35355338, %v1239_v39  ;;  %v3098_v41 = vpop.f32.mrb[5].mxu1 }
 0x3b5   : > { %v1242_v42 = vpop.f32.mrb[6].mxu1 }
 0x3b6   : > { %v3099_v43 = vpop.f32.mrb[7].mxu1  ;;  %v1246_v44 = vsel %vm1198_vm3, %v1245_v40, -inf }
 0x3b7   : > { %1247 = vmax.xlane.f32.xlu1 %v1246_v44 }
 0x3bb   : > { %v1351_v45 = vpop.f32.mrb[8].mxu1 }
 0x3bc   : > { %v1357_v46 = vmul.f32 0.35355338, %v1351_v45  ;;  %v3110_v47 = vpop.f32.mrb[9].mxu1 }
 0x3bd   : > { %v1354_v48 = vpop.f32.mrb[10].mxu1 }
 0x3be   : > { %v3111_v49 = vpop.f32.mrb[11].mxu1  ;;  %v1358_v50 = vsel %vm1198_vm3, %v1357_v46, -inf }
 0x3bf   : > { %1359 = vmax.xlane.f32.xlu0 %v1358_v50 }
 0x3c3   : > { %v1462_v51 = vpop.f32.mrb[12].mxu1 }
 0x3c4   : > { %v1468_v52 = vmul.f32 0.35355338, %v1462_v51  ;;  %v3122_v53 = vpop.f32.mrb[13].mxu1 }
 0x3c5   : > { %v1465_v54 = vpop.f32.mrb[14].mxu1  ;;  %v3331_v53 = vld [vmem:[%s3749_s3] sm:$0xff]  }
 0x3c6   : > { %v3123_v55 = vpop.f32.mrb[15].mxu1  ;;  %v1469_v56 = vsel %vm1198_vm3, %v1468_v52, -inf  ;;  %3143 = vmatpush3.bf16.msra.mxu1 %v3331_v53  ;;  %v3332_v54 = vld [vmem:[%s3749_s3 + $0x8] sm:$0xff]  }
 0x3c7   : > { %1470 = vmax.xlane.f32.xlu1 %v1469_v56  ;;  %3144 = vmatprep.subr.bf16.mxu1 %v3482_v9 }
 0x3ca   : > { %3145 = vmatpush3.bf16.msra.mxu1 %v3332_v54 }
 0x3cb   : > { %v1573_v57 = vpop.f32.mrb[16].mxu1  ;;  %3158 = vmatprep.subr.bf16.mxu1 %v3482_v9 }
 0x3cc   : > { %v1579_v58 = vmul.f32 0.35355338, %v1573_v57  ;;  %v3134_v59 = vpop.f32.mrb[17].mxu1 }
 0x3cd   : > { %v1576_v60 = vpop.f32.mrb[18].mxu1 }
 0x3ce   : > { %v3135_v61 = vpop.f32.mrb[19].mxu1  ;;  %v1580_v62 = vsel %vm1198_vm3, %v1579_v58, -inf }
 0x3cf   : > { %1581 = vmax.xlane.f32.xlu0 %v1580_v62 }
 0x444   : > { %v1248_v63 = vpop.xlane.xlu1 %1247 }
 0x445   : > { %v1249_v0 = vsub.f32 %v1245_v40, %v1248_v63 }
 0x447   : > { %v1250_v2 = vmul.f32 1.442695, %v1249_v0 }
 0x449   : > { %3348 = vpow2.f32 %v1250_v2 }
 0x44c   : > { %v1360_v3 = vpop.xlane.xlu0 %1359 }
 0x44d   : > { %v1361_v4 = vsub.f32 %v1357_v46, %v1360_v3 }
 0x44f   : > { %v1362_v5 = vmul.f32 1.442695, %v1361_v4 }
 0x451   : > { %3350 = vpow2.f32 %v1362_v5 }
 0x453   : > { %v3349_v6 = vpop.eup %3348 }
 0x454   : > { %v1252_v7 = vsel %vm1198_vm3, %v3349_v6, 0.0  ;;  %v1471_v16 = vpop.xlane.xlu1 %1470 }
 0x455   : > { %1253 = vadd.xlane.f32.xlu1 %v1252_v7  ;;  %v1472_v17 = vsub.f32 %v1468_v52, %v1471_v16  ;;  %v2977_v7 = vld [vmem:[%s4260_s26] ss:$0 sm:$0xff]  ;;  %s4265_s26 = sld [smem:[#allocation33_spill]] }
 0x457   : > { %v1473_v18 = vmul.f32 1.442695, %v1472_v17 }
 0x45b   : > { %v3351_v8 = vpop.eup %3350 }
 0x45c   : > { %v1582_v10 = vpop.xlane.xlu0 %1581  ;;  %v1364_v11 = vsel %vm1198_vm3, %v3351_v8, 0.0 }
 0x45d   : > { %v1583_v12 = vsub.f32 %v1579_v58, %v1582_v10  ;;  %1365 = vadd.xlane.f32.xlu0 %v1364_v11 }
 0x45f   : > { %v1584_v13 = vmul.f32 1.442695, %v1583_v12 }
 0x461   : > { %3352 = vpow2.f32 %v1584_v13 }
 0x462   : > { %3354 = vpow2.f32 %v1473_v18 }
 0x466   : > { %1258 = vrot.lane.b32.xlu1 %v3837_v26, %s3491_s15  ;;  %s4262_s15 = scalar_lea.vmem %s4261_s28, %s3702_s5 }
 0x46b   : > { %v3353_v14 = vpop.eup %3352 }
 0x46c   : > { %v1586_v15 = vsel %vm1198_vm3, %v3353_v14, 0.0  ;;  %v3355_v19 = vpop.eup %3354 }
 0x46d   : > { %1587 = vadd.xlane.f32.xlu0 %v1586_v15  ;;  %v1475_v20 = vsel %vm1198_vm3, %v3355_v19, 0.0 }
 0x483   : > { %1370 = vrot.lane.b32.xlu0 %v3837_v26, %s3492_s16 }
 0x48a   : > { %1476 = vadd.xlane.f32.xlu1 %v1475_v20 }
 0x49b   : > { %1481 = vrot.lane.b32.xlu1 %v3837_v26, %s3493_s30 }
 0x49f   : > { %1592 = vrot.lane.b32.xlu1 %v3837_v26, %s3494_s25 }
 0x4e2   : > { %v1254_v21 = vpop.xlane.xlu1 %1253 }
 0x4e3   : > { %3356 = vrcp.f32 %v1254_v21  ;;  %v3333_v21 = vld [vmem:[%s3767_s27] sm:$0xff]  }
 0x4e6   : > { %v1259_v22 = vpop.permute.xlu1 %1258 }
 0x4e7   : > { %v1265_v23 = vsel %vm1263_vm4, %v1259_v22, 0  ;;  %v3335_v22 = vld [vmem:[%s3710_s24] sm:$0x1f]   ;;  %s4266_s24 = scalar_lea.vmem %s4265_s26, %s3702_s5 }
 0x4e8   : > { %3101 = vmatpush3.bf16.msra.mxu0 %v1265_v23  ;;  %v3336_v23 = vld [vmem:[%s3758_s20] sm:$0xff]  }
 0x4e9   : > { %3112 = vmatprep.subr.bf16.mxu0 %v3482_v9 }
 0x4ea   : > { %v1366_v25 = vpop.xlane.xlu0 %1365 }
 0x4eb   : > { %3358 = vrcp.f32 %v1366_v25 }
 0x4ed   : > { %v3357_v24 = vpop.eup %3356 }
 0x4ee   : > { %v1256_v27 = vmul.f32 %v3357_v24, %v3349_v6  ;;  %v3337_v24 = vld [vmem:[%s3758_s20 + $0x8] sm:$0xff]   ;;  %s4263_s20 = sld [smem:[#allocation25_spill]] }
 0x4f0   : > { %v1257_v28 = vpack.c.bf16 %v1256_v27, %v1256_v27 }
 0x4f2   : > { %3103 = vmatmul.mubr.msk.bf16.vlgmr.msra.gmra.mrb[0].mxu0 %vm1198_vm3, %v1257_v28 }
 0x4f3   : > { %3114 = vmatprep.mubr.msk.bf16.mxu0 %vm3483_vm2, %v3482_v9 }
 0x4f4   : > { %s4264_s25 = scalar_lea.vmem %s4263_s20, %s3702_s5 }
 0x4f5   : > { %v3359_v26 = vpop.eup %3358 }
 0x4f6   : > { %v1368_v30 = vmul.f32 %v3359_v26, %v3351_v8 }
 0x4f8   : > { %v1369_v33 = vpack.c.bf16 %v1368_v30, %v1368_v30 }
 0x4fa   : > { %v1588_v29 = vpop.xlane.xlu0 %1587 }
 0x4fe   : > { %v1371_v31 = vpop.permute.xlu0 %1370 }
 0x4ff   : > { %v1376_v32 = vsel %vm1263_vm4, %v1371_v31, 0  ;;  %v2982_v31 = vld [vmem:[%s4264_s25] ss:$0 sm:$0xff] }
 0x500   : > { %3113 = vmatpush3.bf16.msra.mxu0 %v1376_v32 }
 0x501   : > { %3124 = vmatprep.subr.bf16.mxu0 %v3482_v9 }
 0x503   : > { %3115 = vmatmul.mubr.msk.bf16.vlgmr.msra.gmra.mrb[4].mxu0 %vm1198_vm3, %v1369_v33 }
 0x504   : > { %3126 = vmatprep.mubr.msk.bf16.mxu0 %vm3483_vm2, %v3482_v9 }
 0x517   : > { %v1477_v34 = vpop.xlane.xlu1 %1476 }
 0x518   : > { %3360 = vrcp.f32 %v1477_v34 }
 0x519   : > { %3362 = vrcp.f32 %v1588_v29  ;;  %v2981_v29 = vld [vmem:[%s4262_s15] ss:$0 sm:$0xff]  ;;  %s4267_s15 = sld [smem:[#allocation31_spill]] }
 0x51b   : > { %v1482_v35 = vpop.permute.xlu1 %1481 }
 0x51c   : > { %v1487_v36 = vsel %vm1263_vm4, %v1482_v35, 0  ;;  %v2987_v35 = vld [vmem:[%s4266_s24] ss:$0 sm:$0xff] }
 0x51d   : > { %3125 = vmatpush3.bf16.msra.mxu0 %v1487_v36 }
 0x51e   : > { %3136 = vmatprep.subr.bf16.mxu0 %v3482_v9 }
 0x51f   : > { %v1593_v39 = vpop.permute.xlu1 %1592  ;;  %s4268_s16 = scalar_lea.vmem %s4267_s15, %s3702_s5 }
 0x520   : > { %v1598_v42 = vsel %vm1263_vm4, %v1593_v39, 0 }
 0x522   : > { %v3361_v37 = vpop.eup %3360 }
 0x523   : > { %v1479_v38 = vmul.f32 %v3361_v37, %v3355_v19  ;;  %v3363_v41 = vpop.eup %3362 }
 0x524   : > { %v1590_v43 = vmul.f32 %v3363_v41, %v3353_v14 }
 0x525   : > { %v1480_v40 = vpack.c.bf16 %v1479_v38, %v1479_v38 }
 0x526   : > { %v1591_v44 = vpack.c.bf16 %v1590_v43, %v1590_v43 }
 0x527   : > { %3127 = vmatmul.mubr.msk.bf16.vlgmr.msra.gmra.mrb[8].mxu0 %vm1198_vm3, %v1480_v40 }
 0x528   : > { %3137 = vmatpush3.bf16.msra.mxu0 %v1598_v42  ;;  %3138 = vmatprep.mubr.msk.bf16.mxu0 %vm3483_vm2, %v3482_v9 }
 0x529   : > { %3150 = vmatprep.subr.bf16.mxu0 %v3482_v9 }
 0x52f   : > { %3139 = vmatmul.mubr.msk.bf16.vlgmr.msra.gmra.mrb[12].mxu0 %vm1198_vm3, %v1591_v44  ;;  %v2983_v44 = vld [vmem:[%s4268_s16] ss:$0 sm:$0xff] }
 0x530   : > { %3154 = vmatprep.mubr.msk.bf16.mxu0 %vm3483_vm2, %v3482_v9  ;;  %3151 = vmatpush3.bf16.msra.mxu0 %v3336_v23 }
 0x531   : > { %3152 = vmatprep.subr.bf16.mxu0 %v3482_v9 }
 0x534   : > { %3153 = vmatpush3.bf16.msra.mxu0 %v3337_v24 }
 0x535   : > { %3166 = vmatprep.subr.bf16.mxu0 %v3482_v9 }
 0x5c5   : > { %v1301_v45 = vpop.f32.mrb[0].mxu0 }
 0x5c6   : > { %v3104_v46 = vpop.f32.mrb[1].mxu0 }
 0x5c7   : > { %v1304_v47 = vpop.f32.mrb[2].mxu0 }
 0x5c8   : > { %v3105_v48 = vpop.f32.mrb[3].mxu0 }
 0x5d6   : > { %v1412_v49 = vpop.f32.mrb[4].mxu0 }
 0x5d7   : > { %1641 = vrot.lane.b32.xlu0 %v1412_v49, %s3495_s21  ;;  %v3116_v50 = vpop.f32.mrb[5].mxu0 }
 0x5d8   : > { %v1415_v51 = vpop.f32.mrb[6].mxu0 }
 0x5d9   : > { %v3117_v52 = vpop.f32.mrb[7].mxu0 }
 0x5fa   : > { %v1523_v55 = vpop.f32.mrb[8].mxu0 }
 0x5fb   : > { %1645 = vrot.lane.b32.xlu1 %v1523_v55, %s3496_s17  ;;  %v3128_v56 = vpop.f32.mrb[9].mxu0 }
 0x5fc   : > { %v1526_v57 = vpop.f32.mrb[10].mxu0 }
 0x5fd   : > { %v3129_v58 = vpop.f32.mrb[11].mxu0 }
 0x602   : > { %v1634_v59 = vpop.f32.mrb[12].mxu0 }
 0x603   : > { %1649 = vrot.lane.b32.xlu0 %v1634_v59, %s3497_s23  ;;  %v3140_v60 = vpop.f32.mrb[13].mxu0 }
 0x604   : > { %v1637_v61 = vpop.f32.mrb[14].mxu0 }
 0x605   : > { %v3141_v62 = vpop.f32.mrb[15].mxu0 }
 0x649   : > { %v1642_v63 = vpop.permute.xlu0 %1641 }
 0x64a   : > { %v1652_v2 = vsel %vm1198_vm3, %v1301_v45, %v1642_v63 }
 0x66d   : > { %v1646_v0 = vpop.permute.xlu1 %1645 }
 0x66e   : > { %v1654_v3 = vsel %vm1653_vm5, %v1652_v2, %v1646_v0 }
 0x675   : > { %v1650_v4 = vpop.permute.xlu0 %1649 }
 0x676   : > { %v1656_v5 = vsel %vm1655_vm6, %v1654_v3, %v1650_v4 }
 0x677   : > { %v1657_v6 = vpack.c.bf16 %v1656_v5, %v1656_v5 }
 0x679   : > { %3147 = vmatmul.mubr.msk.bf16.vlgmr.msra.gmra.mrb[20].mxu1 %vm1098_vm1, %v1657_v6 }
 0x67a   : > { %3162 = vmatprep.mubr.msk.bf16.mxu1 %vm3483_vm2, %v3482_v9  ;;  %3159 = vmatpush3.bf16.msra.mxu1 %v3333_v21 }
 0x67b   : > { %3160 = vmatprep.subr.bf16.mxu1 %v3482_v9 }
 0x74c   : > { %v1718_v8 = vpop.f32.mrb[20].mxu1 }
 0x74d   : > { %v1719_v10 = vadd.f32 %v2977_v7, %v1718_v8  ;;  %v3148_v11 = vpop.f32.mrb[21].mxu1 }
 0x74e   : > { %v1721_v12 = vpop.f32.mrb[22].mxu1 }
 0x74f   : > { %v3925_v13 = vadd.f32 %v1719_v10, %v3803_v1  ;;  %v3149_v14 = vpop.f32.mrb[23].mxu1  ;;  %v3334_v1 = vld [vmem:[%s3767_s27 + $0x8] sm:$0xff]  }
 0x750   : > { %3161 = vmatpush3.bf16.msra.mxu1 %v3334_v1 }
 0x751   : > { %v1727_v15 = vsel %vm1098_vm1, %v3925_v13, 0.0  ;;  %3172 = vmatprep.subr.bf16.mxu1 %v3482_v9 }
 0x752   : > { %1728 = vadd.xlane.f32.xlu1 %v1727_v15 }
 0x753   : > { %3163 = vmatmul.mubr.msk.bf16.vlgmr.msra.gmra.mrb[24].mxu1 %vm1098_vm1, %v3335_v22 }
 0x754   : > { %3174 = vmatprep.mubr.msk.bf16.mxu1 %vm3483_vm2, %v3482_v9 }
 0x7df   : > { %v1729_v16 = vpop.xlane.xlu1 %1728 }
 0x7e0   : > { %v1730_v17 = vmul.f32 0.03125, %v1729_v16 }
 0x7e2   : > { %v1731_v18 = vsub.f32 %v3925_v13, %v1730_v17 }
 0x7e4   : > { %v1732_v19 = vmul.f32 %v1731_v18, %v1731_v18 }
 0x7e6   : > { %v1733_v20 = vsel %vm1098_vm1, %v1732_v19, 0.0 }
 0x7e7   : > { %1734 = vadd.xlane.f32.xlu0 %v1733_v20 }
 0x826   : > { %v1889_v36 = vpop.f32.mrb[24].mxu1 }
 0x827   : > { %v1890_v37 = vadd.f32 %v2987_v35, %v1889_v36  ;;  %v3164_v38 = vpop.f32.mrb[25].mxu1 }
 0x828   : > { %v1892_v39 = vpop.f32.mrb[26].mxu1 }
 0x829   : > { %v1893_v40 = vadd.f32 %v2987_v35, %v1892_v39  ;;  %v3165_v41 = vpop.f32.mrb[27].mxu1 }
 0x82b   : > { %v3961_v42 = vpack.c.bf16 %v1893_v40, %v1890_v37 }
 0x82d   : > { %2010 = vrot.lane.b32.xlu0 %v3961_v42, %s3484_s4  ;;  %v1901_v43 = vsel %vm1198_vm3, %v3961_v42, 0 }
 0x874   : > { %v1735_v25 = vpop.xlane.xlu0 %1734 }
 0x875   : > { %v1736_v27 = vmul.f32 0.03125, %v1735_v25 }
 0x877   : > { %v1737_v28 = vadd.f32 1e-06, %v1736_v27 }
 0x879   : > { %3364 = vrsqrt.f32 %v1737_v28 }
 0x883   : > { %v3365_v26 = vpop.eup %3364 }
 0x884   : > { %v1739_v30 = vmul.f32 %v3365_v26, %v1731_v18 }
 0x886   : > { %v1746_v32 = vmul.f32 %v2981_v29, %v1739_v30 }
 0x888   : > { %v1753_v33 = vadd.f32 %v2982_v31, %v1746_v32 }
 0x88a   : > { %v1754_v34 = vpack.c.bf16 %v1753_v33, %v1753_v33 }
 0x88c   : > { %3155 = vmatmul.mubr.msk.bf16.vlgmr.msra.gmra.mrb[16].mxu0 %vm1098_vm1, %v1754_v34 }
 0x88d   : > { %3168 = vmatprep.mubr.msk.bf16.mxu0 %vm3483_vm2, %v3482_v9  ;;  %3167 = vmatpush3.bf16.xpose.msra.mxu0 %v1901_v43 }
 0x88e   : > { %3178 = vmatprep.subr.bf16.mxu0 %v3482_v9 }
 0x89f   : > { %v2011_v48 = vpop.permute.xlu0 %2010 }
 0x8a0   : > { %v2016_v52 = vsel %vm1198_vm3, %v2011_v48, 0 }
 0x95f   : > { %v1815_v45 = vpop.f32.mrb[16].mxu0 }
 0x960   : > { %v1816_v46 = vadd.f32 %v2983_v44, %v1815_v45  ;;  %v3156_v47 = vpop.f32.mrb[17].mxu0 }
 0x961   : > { %v1818_v49 = vpop.f32.mrb[18].mxu0 }
 0x962   : > { %v1821_v50 = vpack.c.bf16 %v1816_v46, %v1816_v46  ;;  %v3157_v51 = vpop.f32.mrb[19].mxu0 }
 0x964   : > { %2008 = vrot.lane.b32.xlu1 %v1821_v50, %s3484_s4  ;;  %2119 = vrot.lane.b32.xlu0 %v1821_v50, %s3488_s6  ;;  %s4269_s4 = sld [smem:[#allocation19_spill]] }
 0x965   : > { %3169 = vmatmul.mubr.msk.bf16.vlgmr.msra.gmra.mrb[20].mxu0 %vm1198_vm3, %v1821_v50 }
 0x966   : > { %3179 = vmatpush3.bf16.xpose.msra.mxu0 %v2016_v52  ;;  %3180 = vmatprep.mubr.msk.bf16.mxu0 %vm3483_vm2, %v3482_v9 }
 0x967   : > { %3190 = vmatprep.subr.bf16.mxu0 %v3482_v9 }
 0x968   : > { %2121 = vrot.lane.b32.xlu1 %v3961_v42, %s3488_s6  ;;  %2230 = vrot.lane.b32.xlu0 %v1821_v50, %s3490_s14  ;;  %s4271_s6 = sld [smem:[#allocation26_spill]] }
 0x96c   : > { %2232 = vrot.lane.b32.xlu1 %v3961_v42, %s3490_s14 }
 0x9d6   : > { %v2009_v53 = vpop.permute.xlu1 %2008  ;;  %v2120_v57 = vpop.permute.xlu0 %2119 }
 0x9d7   : > { %3181 = vmatmul.mubr.msk.bf16.vlgmr.msra.gmra.mrb[24].mxu0 %vm1198_vm3, %v2009_v53 }
 0x9d8   : > { %3192 = vmatprep.mubr.msk.bf16.mxu0 %vm3483_vm2, %v3482_v9 }
 0x9da   : > { %v2122_v54 = vpop.permute.xlu1 %2121  ;;  %v2231_v59 = vpop.permute.xlu0 %2230 }
 0x9db   : > { %v2127_v55 = vsel %vm1198_vm3, %v2122_v54, 0 }
 0x9dc   : > { %3191 = vmatpush3.bf16.xpose.msra.mxu0 %v2127_v55 }
 0x9dd   : > { %3202 = vmatprep.subr.bf16.mxu0 %v3482_v9 }
 0x9de   : > { %v2233_v56 = vpop.permute.xlu1 %2232 }
 0x9df   : > { %v2238_v58 = vsel %vm1198_vm3, %v2233_v56, 0 }
 0x9e3   : > { %3193 = vmatmul.mubr.msk.bf16.vlgmr.msra.gmra.mrb[28].mxu0 %vm1198_vm3, %v2120_v57 }
 0x9e4   : > { %3203 = vmatpush3.bf16.xpose.msra.mxu0 %v2238_v58  ;;  %3204 = vmatprep.mubr.msk.bf16.mxu0 %vm3483_vm2, %v3482_v9 }
 0x9e5   : > { %3214 = vmatprep.subr.bf16.mxu0 %v3482_v9 }
 0x9eb   : > { %3205 = vmatmul.mubr.msk.bf16.vlgmr.msra.gmra.mrb[32].mxu0 %vm1198_vm3, %v2231_v59 }
 0x9ec   : > { %3218 = vmatprep.mubr.msk.bf16.mxu0 %vm3483_vm2, %v3482_v9 }
 0xa38   : > { %v1937_v60 = vpop.f32.mrb[20].mxu0 }
 0xa39   : > { %v1943_v61 = vmul.f32 0.35355338, %v1937_v60  ;;  %v3170_v62 = vpop.f32.mrb[21].mxu0 }
 0xa3a   : > { %v1940_v63 = vpop.f32.mrb[22].mxu0 }
 0xa3b   : > { %v3171_v0 = vpop.f32.mrb[23].mxu0  ;;  %v1945_v2 = vsel %vm1944_vm7, %v1943_v61, -inf }
 0xa3c   : > { %1946 = vmax.xlane.f32.xlu1 %v1945_v2 }
 0xaaa   : > { %v2052_v3 = vpop.f32.mrb[24].mxu0 }
 0xaab   : > { %v2058_v4 = vmul.f32 0.35355338, %v2052_v3  ;;  %v3182_v5 = vpop.f32.mrb[25].mxu0 }
 0xaac   : > { %v2055_v6 = vpop.f32.mrb[26].mxu0 }
 0xaad   : > { %v3183_v7 = vpop.f32.mrb[27].mxu0  ;;  %v2059_v8 = vsel %vm1944_vm7, %v2058_v4, -inf }
 0xaae   : > { %2060 = vmax.xlane.f32.xlu0 %v2059_v8 }
 0xab6   : > { %v2163_v10 = vpop.f32.mrb[28].mxu0 }
 0xab7   : > { %v2169_v11 = vmul.f32 0.35355338, %v2163_v10  ;;  %v3194_v12 = vpop.f32.mrb[29].mxu0 }
 0xab8   : > { %v2166_v14 = vpop.f32.mrb[30].mxu0  ;;  %v3338_v12 = vld [vmem:[%s4269_s4] sm:$0xff]  }
 0xab9   : > { %v3195_v15 = vpop.f32.mrb[31].mxu0  ;;  %v2170_v16 = vsel %vm1944_vm7, %v2169_v11, -inf  ;;  %3215 = vmatpush3.bf16.msra.mxu0 %v3338_v12  ;;  %v3339_v14 = vld [vmem:[%s4269_s4 + $0x8] sm:$0xff]  }
 0xaba   : > { %2171 = vmax.xlane.f32.xlu0 %v2170_v16  ;;  %3216 = vmatprep.subr.bf16.mxu0 %v3482_v9 }
 0xabd   : > { %3217 = vmatpush3.bf16.msra.mxu0 %v3339_v14 }
 0xabe   : > { %v2274_v17 = vpop.f32.mrb[32].mxu0  ;;  %3230 = vmatprep.subr.bf16.mxu0 %v3482_v9 }
 0xabf   : > { %v2280_v18 = vmul.f32 0.35355338, %v2274_v17  ;;  %v3206_v19 = vpop.f32.mrb[33].mxu0 }
 0xac0   : > { %v2277_v20 = vpop.f32.mrb[34].mxu0 }
 0xac1   : > { %v3207_v21 = vpop.f32.mrb[35].mxu0  ;;  %v2281_v1 = vsel %vm1944_vm7, %v2280_v18, -inf }
 0xac2   : > { %2282 = vmax.xlane.f32.xlu1 %v2281_v1 }
 0xac9   : > { %v1947_v22 = vpop.xlane.xlu1 %1946 }
 0xaca   : > { %v1948_v23 = vsub.f32 %v1943_v61, %v1947_v22 }
 0xacc   : > { %v1949_v24 = vmul.f32 1.442695, %v1948_v23 }
 0xace   : > { %3366 = vpow2.f32 %v1949_v24 }
 0xad8   : > { %v3367_v25 = vpop.eup %3366 }
 0xad9   : > { %v1951_v27 = vsel %vm1944_vm7, %v3367_v25, 0.0 }
 0xada   : > { %1952 = vadd.xlane.f32.xlu0 %v1951_v27 }
 0xb3b   : > { %v2061_v28 = vpop.xlane.xlu0 %2060 }
 0xb3c   : > { %v2062_v26 = vsub.f32 %v2058_v4, %v2061_v28 }
 0xb3e   : > { %v2063_v29 = vmul.f32 1.442695, %v2062_v26 }
 0xb40   : > { %3368 = vpow2.f32 %v2063_v29  ;;  %v3000_v29 = vld [vmem:[%s1070_s10] ss:$0 sm:$0xff] }
 0xb47   : > { %v2172_v30 = vpop.xlane.xlu0 %2171 }
 0xb48   : > { %v2173_v31 = vsub.f32 %v2169_v11, %v2172_v30 }
 0xb4a   : > { %v3369_v32 = vpop.eup %3368  ;;  %v2174_v33 = vmul.f32 1.442695, %v2173_v31 }
 0xb4b   : > { %v2065_v34 = vsel %vm1944_vm7, %v3369_v32, 0.0 }
 0xb4c   : > { %3370 = vpow2.f32 %v2174_v33  ;;  %2066 = vadd.xlane.f32.xlu1 %v2065_v34 }
 0xb4f   : > { %v2283_v37 = vpop.xlane.xlu1 %2282 }
 0xb50   : > { %v2284_v38 = vsub.f32 %v2280_v18, %v2283_v37 }
 0xb52   : > { %v2285_v39 = vmul.f32 1.442695, %v2284_v38 }
 0xb54   : > { %3372 = vpow2.f32 %v2285_v39 }
 0xb56   : > { %v3371_v35 = vpop.eup %3370 }
 0xb57   : > { %v2176_v36 = vsel %vm1944_vm7, %v3371_v35, 0.0 }
 0xb58   : > { %2177 = vadd.xlane.f32.xlu0 %v2176_v36 }
 0xb5d   : > { %2071 = vrot.lane.b32.xlu1 %v3961_v42, %s3486_s7 }
 0xb5e   : > { %v3373_v40 = vpop.eup %3372 }
 0xb5f   : > { %v2287_v41 = vsel %vm1944_vm7, %v3373_v40, 0.0 }
 0xb67   : > { %v1953_v43 = vpop.xlane.xlu0 %1952 }
 0xb68   : > { %3374 = vrcp.f32 %v1953_v43  ;;  %v3340_v43 = vld [vmem:[%s3785_s12] sm:$0xff]  }
 0xb6e   : > { %1958 = vrot.lane.b32.xlu0 %v3961_v42, %s3485_s29 }
 0xb72   : > { %2293 = vrot.lane.b32.xlu0 %v3961_v42, %s3489_s8  ;;  %v3375_v45 = vpop.eup %3374  ;;  %s4272_s8 = scalar_lea.vmem %s4271_s6, %s3702_s5 }
 0xb73   : > { %v1955_v47 = vmul.f32 %v3375_v45, %v3367_v25  ;;  %v3343_v45 = vld [vmem:[%s3795_s1 + $0x8] sm:$0xff]  }
 0xb75   : > { %v1956_v51 = vpack.c.bf16 %v1955_v47, %v1955_v47 }
 0xb81   : > { %2288 = vadd.xlane.f32.xlu1 %v2287_v41 }
 0xb92   : > { %2182 = vrot.lane.b32.xlu1 %v3961_v42, %s3487_s0 }
 0xbd9   : > { %v2067_v44 = vpop.xlane.xlu1 %2066 }
 0xbda   : > { %3376 = vrcp.f32 %v2067_v44  ;;  %v3341_v44 = vld [vmem:[%s3785_s12 + $0x8] sm:$0xff]  }
 0xbdd   : > { %v2072_v50 = vpop.permute.xlu1 %2071 }
 0xbde   : > { %v2077_v53 = vsel %vm1963_vm8, %v2072_v50, 0  ;;  %v3004_v50 = vld [vmem:[%s4272_s8] ss:$0 sm:$0xff] }
 0xbe4   : > { %v3377_v52 = vpop.eup %3376 }
 0xbe5   : > { %v2178_v46 = vpop.xlane.xlu0 %2177  ;;  %v2069_v42 = vmul.f32 %v3377_v52, %v3369_v32 }
 0xbe6   : > { %3378 = vrcp.f32 %v2178_v46 }
 0xbe7   : > { %v2070_v54 = vpack.c.bf16 %v2069_v42, %v2069_v42 }
 0xbe9   : > { %v1959_v48 = vpop.permute.xlu0 %1958 }
 0xbea   : > { %v1965_v49 = vsel %vm1963_vm8, %v1959_v48, 0 }
 0xbeb   : > { %3173 = vmatpush3.bf16.msra.mxu1 %v1965_v49 }
 0xbec   : > { %3184 = vmatprep.subr.bf16.mxu1 %v3482_v9 }
 0xbed   : > { %v2294_v60 = vpop.permute.xlu0 %2293 }
 0xbee   : > { %3175 = vmatmul.mubr.msk.bf16.vlgmr.msra.gmra.mrb[28].mxu1 %vm1944_vm7, %v1956_v51  ;;  %v2299_v62 = vsel %vm1963_vm8, %v2294_v60, 0 }
 0xbef   : > { %3185 = vmatpush3.bf16.msra.mxu1 %v2077_v53  ;;  %3186 = vmatprep.mubr.msk.bf16.mxu1 %vm3483_vm2, %v3482_v9 }
 0xbf0   : > { %3196 = vmatprep.subr.bf16.mxu1 %v3482_v9  ;;  %v3379_v55 = vpop.eup %3378 }
 0xbf1   : > { %v2180_v57 = vmul.f32 %v3379_v55, %v3371_v35  ;;  %v3344_v55 = vld [vmem:[%s3795_s1 + $0x10] sm:$0xff]  }
 0xbf3   : > { %v2181_v61 = vpack.c.bf16 %v2180_v57, %v2180_v57  ;;  %v3006_v57 = vld [vmem:[%s1078_s13] ss:$0 sm:$0xff]  ;;  %s4277_s13 = sld [smem:[#allocation9_spill]] }
 0xbf6   : > { %3187 = vmatmul.mubr.msk.bf16.vlgmr.msra.gmra.mrb[32].mxu1 %vm1944_vm7, %v2070_v54 }
 0xbf7   : > { %3198 = vmatprep.mubr.msk.bf16.mxu1 %vm3483_vm2, %v3482_v9 }
 0xbf9   : > { %p3016_p1 = scmp.ne.s32.totalorder %s4277_s13, 1 }
 0xbfa   : > { %s4279_s28 = sld [smem:[#allocation41_spill]] (!%p3016_p1) }
 0xc0e   : > { %v2289_v56 = vpop.xlane.xlu1 %2288 }
 0xc0f   : > { %3380 = vrcp.f32 %v2289_v56  ;;  %v3345_v56 = vld [vmem:[%s3795_s1 + $0x18] sm:$0xff]  }
 0xc12   : > { %v2183_v58 = vpop.permute.xlu1 %2182 }
 0xc13   : > { %v2188_v59 = vsel %vm1963_vm8, %v2183_v58, 0 }
 0xc14   : > { %3197 = vmatpush3.bf16.msra.mxu1 %v2188_v59 }
 0xc15   : > { %3208 = vmatprep.subr.bf16.mxu1 %v3482_v9 }
 0xc17   : > { %3199 = vmatmul.mubr.msk.bf16.vlgmr.msra.gmra.mrb[36].mxu1 %vm1944_vm7, %v2181_v61 }
 0xc18   : > { %3209 = vmatpush3.bf16.msra.mxu1 %v2299_v62  ;;  %3210 = vmatprep.mubr.msk.bf16.mxu1 %vm3483_vm2, %v3482_v9 }
 0xc19   : > { %v3381_v63 = vpop.eup %3380  ;;  %3222 = vmatprep.subr.bf16.mxu1 %v3482_v9 }
 0xc1a   : > { %v2291_v0 = vmul.f32 %v3381_v63, %v3373_v40 }
 0xc1c   : > { %v2292_v2 = vpack.c.bf16 %v2291_v0, %v2291_v0 }
 0xc1f   : > { %3211 = vmatmul.mubr.msk.bf16.vlgmr.msra.gmra.mrb[40].mxu1 %vm1944_vm7, %v2292_v2 }
 0xc20   : > { %3226 = vmatprep.mubr.msk.bf16.mxu1 %vm3483_vm2, %v3482_v9  ;;  %3223 = vmatpush3.bf16.msra.mxu1 %v3340_v43 }
 0xc21   : > { %3224 = vmatprep.subr.bf16.mxu1 %v3482_v9 }
 0xc24   : > { %3225 = vmatpush3.bf16.msra.mxu1 %v3341_v44 }
 0xcc1   : > { %v2001_v3 = vpop.f32.mrb[28].mxu1 }
 0xcc2   : > { %v3176_v4 = vpop.f32.mrb[29].mxu1 }
 0xcc3   : > { %v2004_v5 = vpop.f32.mrb[30].mxu1 }
 0xcc4   : > { %v3177_v6 = vpop.f32.mrb[31].mxu1 }
 0xcc9   : > { %v2113_v7 = vpop.f32.mrb[32].mxu1 }
 0xcca   : > { %2342 = vrot.lane.b32.xlu1 %v2113_v7, %s3495_s21  ;;  %v3188_v8 = vpop.f32.mrb[33].mxu1 }
 0xccb   : > { %v2116_v10 = vpop.f32.mrb[34].mxu1 }
 0xccc   : > { %v3189_v11 = vpop.f32.mrb[35].mxu1 }
 0xcea   : > { %v2224_v15 = vpop.f32.mrb[36].mxu1 }
 0xceb   : > { %2346 = vrot.lane.b32.xlu0 %v2224_v15, %s3496_s17  ;;  %v3200_v16 = vpop.f32.mrb[37].mxu1  ;;  %s4273_s17 = sld [smem:[#allocation27_spill]] }
 0xcec   : > { %v2227_v17 = vpop.f32.mrb[38].mxu1 }
 0xced   : > { %v3201_v18 = vpop.f32.mrb[39].mxu1 }
 0xcf2   : > { %v2335_v19 = vpop.f32.mrb[40].mxu1 }
 0xcf3   : > { %2350 = vrot.lane.b32.xlu1 %v2335_v19, %s3497_s23  ;;  %v3212_v20 = vpop.f32.mrb[41].mxu1  ;;  %s4274_s23 = scalar_lea.vmem %s4273_s17, %s3702_s5 }
 0xcf4   : > { %v2338_v21 = vpop.f32.mrb[42].mxu1  ;;  %v3005_v52 = vld [vmem:[%s4274_s23] ss:$0 sm:$0xff] }
 0xcf5   : > { %v3213_v1 = vpop.f32.mrb[43].mxu1 }
 0xcf6   : > { %v3018_v1 = vld [vmem:[%s4279_s28] ss:$0 sm:$0xff] (!%p3016_p1) }
 0xd3c   : > { %v2343_v22 = vpop.permute.xlu1 %2342 }
 0xd3d   : > { %v2353_v24 = vsel %vm1198_vm3, %v2001_v3, %v2343_v22 }
 0xd5d   : > { %v2347_v23 = vpop.permute.xlu0 %2346 }
 0xd5e   : > { %v2354_v25 = vsel %vm1653_vm5, %v2353_v24, %v2347_v23 }
 0xd65   : > { %v2351_v27 = vpop.permute.xlu1 %2350 }
 0xd66   : > { %v2355_v28 = vsel %vm1655_vm6, %v2354_v25, %v2351_v27 }
 0xd67   : > { %v2356_v26 = vpack.c.bf16 %v2355_v28, %v2355_v28 }
 0xd69   : > { %3219 = vmatmul.mubr.msk.bf16.vlgmr.msra.gmra.mrb[36].mxu0 %vm1098_vm1, %v2356_v26 }
 0xd6a   : > { %3238 = vmatprep.mubr.msk.bf16.mxu0 %vm3483_vm2, %v3482_v9 }
 0xe3c   : > { %v2417_v30 = vpop.f32.mrb[36].mxu0 }
 0xe3d   : > { %v2418_v31 = vadd.f32 %v3000_v29, %v2417_v30  ;;  %v3220_v32 = vpop.f32.mrb[37].mxu0 }
 0xe3e   : > { %v2420_v33 = vpop.f32.mrb[38].mxu0 }
 0xe3f   : > { %v2423_v34 = vadd.f32 %v2418_v31, %v3925_v13  ;;  %v3221_v35 = vpop.f32.mrb[39].mxu0  ;;  %v3342_v13 = vld [vmem:[%s3795_s1] sm:$0xff]  }
 0xe40   : > { %3231 = vmatpush3.bf16.msra.mxu0 %v3342_v13 }
 0xe41   : > { %v2426_v36 = vsel %vm1098_vm1, %v2423_v34, 0.0  ;;  %3232 = vmatprep.subr.bf16.mxu0 %v3482_v9 }
 0xe42   : > { %2427 = vadd.xlane.f32.xlu0 %v2426_v36 }
 0xe44   : > { %3233 = vmatpush3.bf16.msra.mxu0 %v3343_v45 }
 0xe45   : > { %3234 = vmatprep.subr.bf16.mxu0 %v3482_v9 }
 0xe48   : > { %3235 = vmatpush3.bf16.msra.mxu0 %v3344_v55 }
 0xe49   : > { %3236 = vmatprep.subr.bf16.mxu0 %v3482_v9  ;;  %v3015_v9 = vld [vmem:[%s1086_s22] ss:$0 sm:$0xff]  ;;  %s4278_s22 = sld [smem:[#allocation40_spill]] (!%p3016_p1) }
 0xe4c   : > { %3237 = vmatpush3.bf16.msra.mxu0 %v3345_v56 }
 0xe4f   : > { %v3017_v20 = vld [vmem:[%s4278_s22] ss:$0 sm:$0xff] (!%p3016_p1) }
 0xecf   : > { %v2428_v37 = vpop.xlane.xlu0 %2427 }
 0xed0   : > { %v2429_v38 = vmul.f32 0.03125, %v2428_v37 }
 0xed2   : > { %v2430_v39 = vsub.f32 %v2423_v34, %v2429_v38 }
 0xed4   : > { %v2431_v40 = vmul.f32 %v2430_v39, %v2430_v39 }
 0xed6   : > { %v2432_v41 = vsel %vm1098_vm1, %v2431_v40, 0.0 }
 0xed7   : > { %2433 = vadd.xlane.f32.xlu1 %v2432_v41 }
 0xf64   : > { %v2434_v46 = vpop.xlane.xlu1 %2433 }
 0xf65   : > { %v2435_v47 = vmul.f32 0.03125, %v2434_v46 }
 0xf67   : > { %v2436_v48 = vadd.f32 1e-06, %v2435_v47 }
 0xf69   : > { %3382 = vrsqrt.f32 %v2436_v48 }
 0xf73   : > { %v3383_v49 = vpop.eup %3382 }
 0xf74   : > { %v2438_v51 = vmul.f32 %v3383_v49, %v2430_v39 }
 0xf76   : > { %v2445_v53 = vmul.f32 %v3004_v50, %v2438_v51 }
 0xf78   : > { %v2452_v42 = vadd.f32 %v3005_v52, %v2445_v53 }
 0xf7a   : > { %v2453_v54 = vpack.c.bf16 %v2452_v42, %v2452_v42 }
 0xf7c   : > { %3227 = vmatmul.mubr.msk.bf16.vlgmr.msra.gmra.mrb[44].mxu1 %vm1098_vm1, %v2453_v54 }
0x104f   : > { %v2514_v58 = vpop.f32.mrb[44].mxu1 }
0x1050   : > { %v2515_v59 = vadd.f32 %v3006_v57, %v2514_v58  ;;  %v3228_v60 = vpop.f32.mrb[45].mxu1 }
0x1051   : > { %v2517_v61 = vpop.f32.mrb[46].mxu1 }
0x1052   : > { %v2520_v62 = vmax.f32 %v2515_v59, 0.0  ;;  %v3229_v63 = vpop.f32.mrb[47].mxu1 }
0x1054   : > { %v2521_v0 = vpack.c.bf16 %v2520_v62, %v2520_v62 }
0x1056   : > { %3239 = vmatmul.mubr.msk.bf16.vlgmr.msra.gmra.mrb[40].mxu0 %vm2554_vm9, %v2521_v0 }
0x1128   : > { %2611 = sbr.rel (%p3016_p1) target bundleno = 4712 (0x1268), region = 124 }
0x1129   : > { %v2592_v2 = vpop.f32.mrb[40].mxu0 }
0x112a   : > { %v2598_v3 = vadd.f32 %v2592_v2, %v2423_v34  ;;  %v3240_v4 = vpop.f32.mrb[41].mxu0 }
0x112b   : > { %v2595_v5 = vpop.f32.mrb[42].mxu0 }
0x112c   : > { %v2606_v6 = vadd.f32 %v3015_v9, %v2598_v3  ;;  %v3241_v7 = vpop.f32.mrb[43].mxu0 }
0x112e   : > { %2607 = vst.msk [vmem:[#allocation2] sm:$0xff] %vm1098_vm1, %v2606_v6  ;;  %v2614_v8 = vsel (!%p3016_p1), %vm1098_vm1, %v2606_v6, 0.0 }
0x112f   : > { %2615 = vadd.xlane.f32.xlu0 %v2614_v8 }
0x11bc   : > { %v2616_v10 = vpop.xlane.xlu0 %2615 }
0x11bd   : > { %v2617_v11 = vmul.f32 0.03125, %v2616_v10 }
0x11bf   : > { %v2618_v12 = vsub.f32 %v2606_v6, %v2617_v11 }
0x11c1   : > { %v2619_v14 = vmul.f32 %v2618_v12, %v2618_v12 }
0x11c3   : > { %v2620_v15 = vsel %vm1098_vm1, %v2619_v14, 0.0 }
0x11c4   : > { %2621 = vadd.xlane.f32.xlu0 %v2620_v15 }
0x1251   : > { %v2622_v16 = vpop.xlane.xlu0 %2621 }
0x1252   : > { %v2623_v17 = vmul.f32 0.03125, %v2622_v16 }
0x1254   : > { %v2624_v18 = vadd.f32 1e-06, %v2623_v17 }
0x1256   : > { %3384 = vrsqrt.f32 %v2624_v18 }
0x1260   : > { %v3385_v19 = vpop.eup %3384 }
0x1261   : > { %v2626_v21 = vmul.f32 %v3385_v19, %v2618_v12 }
0x1263   : > { %v2633_v22 = vmul.f32 %v3017_v20, %v2626_v21 }
0x1265   : > { %v2640_v23 = vadd.f32 %v3018_v1, %v2633_v22 }
0x1267   : > { %2641 = vst.msk [vmem:[%s1003_s18] sm:$0xff] %vm1098_vm1, %v2640_v23 }
0x1268 PF: > { %s4280_s15 = sld [smem:[#allocation10_spill]]  ;;  %s4281_s16 = sld [smem:[#allocation7_spill]] }
0x1269   : > { %s4283_s10 = sld [smem:[#allocation42_spill]]  ;;  %s2656_s6 = sshll.u32 %s1003_s18, 4  ;;  %s2657_s6 = int_to_ptr.vmem [resolvable:$true] %s2656_s6 }
0x126a   : > { %s3386_s21 = scalar_lea.vmem %s2657_s6, 128  ;;  %s3498_s17 = smov [#allocation3]  }
0x126b   : > { %p3387_p2 = scmp.ne.s32.totalorder %s2657_s6, %s3386_s21  ;;  %s3390_s23 = sshll.u32 %s3498_s17, 4  ;;  %s3391_s23 = int_to_ptr.vmem [resolvable:$false] %s3390_s23 }
0x126c   : > { %s3392_s30 = scalar_lea.vmem %s3391_s23, 256  ;;  %p3393_p6 = scmp.lt.s32.totalorder %s2657_s6, %s3391_s23 }
0x126d   : > { %p3388_p4 = pnand %p3387_p2, %p3673_p3  ;;  %p3394_p7 = scmp.lt.s32.totalorder %s3392_s30, %s3386_s21 }
0x126e   : > { %s3020_s29 = sshll.u32 %s4280_s15, 7  ;;  %s4284_s8 = sand.u32 1, %s4281_s16  }
0x126f   : > { %s4103_s12 = scalar_lea.hbm %s4283_s10, %s3020_s29  ;;  %s2643_s14 = scalar_lea.sflag [#allocation4], %s4284_s8 }
0x1270   : > { %p3389_p5 = pneg %p3388_p4  ;;  %p3395_p8 = por %p3394_p7, %p3393_p6 }
0x1272   : > { %p3396_p10 = pnand %p3395_p8, %p3389_p5 }
0x1274   : > { %3399 = shalt.err (!%p3396_p10)
}
0x1275   : > { %s3400_s2 = scalar_lea.hbm %s4103_s12, 128  ;;  %s3404_s25 = scalar_lea.hbm %s4283_s10, 256 }
0x1276   : > { %p3401_p11 = scmp.ne.s32.totalorder %s4103_s12, %s3400_s2  ;;  %p3405_p0 = scmp.lt.u32.totalorder %s4103_s12, %s4283_s10 }
0x1277   : > { %p3406_p1 = scmp.lt.u32.totalorder %s3404_s25, %s3400_s2  ;;  %p3408_p4 = scmp.lt.u32.totalorder %s3400_s2, %s4103_s12 }
0x1278   : > { %p3402_p12 = pnand %p3401_p11, %p3673_p3 }
0x1279   : > { %p3407_p2 = por %p3406_p1, %p3405_p0 }
0x127a   : > { %p3403_p13 = pneg %p3402_p12 }
0x127b   : > { %p3409_p5 = por %p3408_p4, %p3407_p2 }
0x127d   : > { %p3410_p6 = pnand %p3409_p5, %p3403_p13 }
0x127f   : > { %3413 = shalt.err (!%p3410_p6)
}
0x1280   : > { %3242 = dma.vmem_to_hbm [thread:$0]  (%p3673_p3), %s2657_s6, 128, %s4103_s12, %s2643_s14  }
0x1281 PF: > { %s4285_s26 = sld [smem:[#allocation13_spill]]  ;;  %s4286_s13 = sld [smem:[#allocation6_spill]] }
0x1287   : > { %p3248_p7 = scmp.ge.s32.totalorder %s4285_s26, 2  ;;  %s2668_s1 = sand.u32 1, %s4286_s13  }
0x1288   : > { %s2669_s22 = scalar_lea.sflag [#allocation4], %s2668_s1 }
0x1289   : > { %p3245_p8 = pnand %p3248_p7, %p3683_p9 }
0x128b   : > { %3447 = dma.done.wait (!%p3245_p8), %s2669_s22, 128  }
0x128c   : > { %3449 = vsyncadd (!%p3245_p8), %s2669_s22, 4294967168  ;;  %s37_s0 = sadd.s32 1, %s4285_s26   ;;  %s4288_s5 = sld [smem:[#allocation7_spill]] }
0x128d   : > { %p34_p10 = scmp.ge.s32.totalorder %s37_s0, 6   ;;  %s4289_s26 = sld [smem:[#allocation8_spill]] }
0x128e   : > { %s4290_s27 = sld [smem:[#allocation18_spill]]  ;;  %s4291_s28 = sld [smem:[#allocation11_spill]] }
0x128f   : > { %s4292_s6 = sld [smem:[#allocation12_spill]]  ;;  %s4293_s2 = sld [smem:[#allocation14_spill]] }
0x1290   : > { %s4294_s29 = sld [smem:[#allocation16_spill]]  ;;  %36 = sbr.rel (!%p34_p10) target bundleno = 29 (0x1d), region = 222 }
0x1297   :  { %2674 = vsyncpa [#allocation4], 1 }
0x1298   :  { %2676 = vsyncpa [#allocation4 + $0x1], 1 }

</bundles_post_ra>
